<compile_context>
chip_gen: v7x
topology: tpu7x:2x2x1
jax: 0.10.0
libtpu: 0.0.40
codegen_flags: <defaults>
</compile_context>

<pallas_src>
import jax
import jax.numpy as jnp
from jax.experimental import pallas as pl
from jax.experimental.pallas import tpu as pltpu

# ---- synthetic "bert-base-like" small config --------------------------------
BERT_SIZE = 128           # hidden size H (real model: 768)
CHANNELS = 4 + 1          # encoder layers + 1 (real model: 12 + 1)
HSIZE = 128               # hsize (real model: 256)
HLEN = 8                  # hlen / prefix length (real model: 10)
BATCH = 2
QLEN = 8                  # seq len of q_reps[-1]
DLEN = 16                 # seq len of d_reps[-1]

N_LAYERS = CHANNELS - 1                 # 4 prefix "layer" blocks
HALF = N_LAYERS * BERT_SIZE             # 512  (one parity-half of theta)
THETA_OUT = 2 * HALF                    # 1024 == BERT_SIZE * (CHANNELS - 1) * 2
M_ROWS = 4 * HLEN                       # stacked rows: q interleaved + d interleaved
K2 = 6 * HSIZE                          # layer-2 K: 2 parity blocks x 3 branches

# Column tiling of the (only big) layer-2 operand.
TILE_LAYERS = 2
assert N_LAYERS % TILE_LAYERS == 0
N_TILES = N_LAYERS // TILE_LAYERS
TILE_N = TILE_LAYERS * BERT_SIZE

_FLOPS = (2 * M_ROWS * BERT_SIZE * (3 * HSIZE)   # layer-1 (duplicated rows: MXU-free)
          + 2 * M_ROWS * K2 * HALF               # fused layer-2 + interleave matmul
          + 2 * BATCH * BERT_SIZE * BERT_SIZE    # res matmul
          + 2 * BATCH * BERT_SIZE)               # cls dot (VPU + lane reduce)


# -----------------------------------------------------------------------------
# Fused kernel: prefix MLP head (column-tiled) + scoring head (last step)
# -----------------------------------------------------------------------------
def _fused_head_kernel(theta2_ref, w1_ref, b1_ref, mask_ref, w2_ref, b2_ref,
                       qrep_ref, drep_ref, resw_ref, resb_ref, clsw_ref, clsb_ref,
                       pq_ref, pd_ref, score_ref, feat_ref,
                       lhs_ref):
    f32 = jnp.float32
    step = pl.program_id(0)

    # ---- layer-1 + relu + parity/branch masking: once, cached in VMEM scratch.
    # (With "parallel" tile semantics at prod, recompute this per step instead.)
    @pl.when(step == 0)
    def _():
        h = jnp.dot(theta2_ref[...], w1_ref[...], preferred_element_type=f32)
        h = jnp.maximum(h + b1_ref[...], 0.0)                     # (4*HLEN, 3*HSIZE)
        # lhs = [h | h] * mask, written as two lane-aligned slices (no 2x temp).
        lhs_ref[:, :3 * HSIZE] = (h * mask_ref[:, :3 * HSIZE]).astype(jnp.bfloat16)
        lhs_ref[:, 3 * HSIZE:] = (h * mask_ref[:, 3 * HSIZE:]).astype(jnp.bfloat16)

    # ---- one wide layer-2 push per column tile; rows come out already in the
    # reshape(2*hlen, -1, H).permute(1, 0, 2) interleaved order.
    out = jnp.dot(lhs_ref[...], w2_ref[...],
                  preferred_element_type=f32) + b2_ref[...]       # (4*HLEN, TILE_N)
    for l in range(TILE_LAYERS):                                  # lane slices only
        pq_ref[l, :, :] = out[:2 * HLEN, l * BERT_SIZE:(l + 1) * BERT_SIZE]
        pd_ref[l, :, :] = out[2 * HLEN:, l * BERT_SIZE:(l + 1) * BERT_SIZE]

    # ---- scoring head: finalize on the last tile (outputs stay VMEM-resident).
    @pl.when(step == pl.num_programs(0) - 1)
    def _():
        # AdaptiveAvgPool2d((1, H)) on (B, L, H) == mean over seq: sum * (1/L).
        x1 = jnp.sum(qrep_ref[...], axis=1) * (1.0 / QLEN)        # (B, H)
        x2 = jnp.sum(drep_ref[...], axis=1) * (1.0 / DLEN)        # (B, H)
        x = jnp.maximum(x1, x2)                                   # torch.max(x1, x2)
        feature = (jnp.dot(x, resw_ref[...], preferred_element_type=f32)
                   + resb_ref[...] + x)                           # res(x) + x
        feat_ref[...] = feature
        # cls: (H -> 1) Linear as VPU multiply + lane reduction.
        score_ref[...] = (jnp.sum(feature * clsw_ref[...], axis=-1, keepdims=True)
                          + clsb_ref[...])


def fused_head(packed, q_rep_last, d_rep_last):
    args = (packed["theta2"], packed["w1"], packed["b1"], packed["mask"],
            packed["w2"], packed["b2"],
            q_rep_last, d_rep_last,
            packed["res_w"], packed["res_b"], packed["cls_w_row"], packed["cls_b"])

    def resident(shape):
        nd = len(shape)
        return pl.BlockSpec(shape, lambda t, nd=nd: (0,) * nd)

    in_specs = [
        resident(packed["theta2"].shape),                       # (4*HLEN, H) bf16
        resident(packed["w1"].shape),                           # (H, 3*HSIZE) bf16
        resident(packed["b1"].shape),                           # (1, 3*HSIZE) f32
        resident(packed["mask"].shape),                         # (4*HLEN, 6*HSIZE) f32
        pl.BlockSpec((K2, TILE_N), lambda t: (0, t)),           # w2 column tile (bf16)
        pl.BlockSpec((M_ROWS, TILE_N), lambda t: (0, t)),       # bias column tile (f32)
        resident(q_rep_last.shape),
        resident(d_rep_last.shape),
        resident(packed["res_w"].shape),
        resident(packed["res_b"].shape),
        resident(packed["cls_w_row"].shape),
        resident(packed["cls_b"].shape),
    ]
    out_specs = (
        pl.BlockSpec((TILE_LAYERS, 2 * HLEN, BERT_SIZE), lambda t: (t, 0, 0)),
        pl.BlockSpec((TILE_LAYERS, 2 * HLEN, BERT_SIZE), lambda t: (t, 0, 0)),
        pl.BlockSpec((BATCH, 1), lambda t: (0, 0)),
        pl.BlockSpec((BATCH, BERT_SIZE), lambda t: (0, 0)),
    )
    out_shape = (
        jax.ShapeDtypeStruct((N_LAYERS, 2 * HLEN, BERT_SIZE), jnp.float32),
        jax.ShapeDtypeStruct((N_LAYERS, 2 * HLEN, BERT_SIZE), jnp.float32),
        jax.ShapeDtypeStruct((BATCH, 1), jnp.float32),
        jax.ShapeDtypeStruct((BATCH, BERT_SIZE), jnp.float32),
    )

    in_bytes = int(sum(int(a.size) * a.dtype.itemsize for a in args))
    out_bytes = int((2 * N_LAYERS * 2 * HLEN * BERT_SIZE + BATCH * (BERT_SIZE + 1)) * 4)

    grid_spec = pltpu.PrefetchScalarGridSpec(
        num_scalar_prefetch=0,
        grid=(N_TILES,),
        in_specs=in_specs,
        out_specs=out_specs,
        scratch_shapes=[pltpu.VMEM((M_ROWS, K2), jnp.bfloat16)],   # cached LHS
    )
    return pl.pallas_call(
        _fused_head_kernel,
        out_shape=out_shape,
        grid_spec=grid_spec,
        # Column tiling keeps the per-step working set small (a few MB even at
        # prod H=768 / THETA_OUT=18432), so 32 MiB is safe on v5e/v6e/v7x alike.
        compiler_params=pltpu.CompilerParams(
            dimension_semantics=("arbitrary",),
            vmem_limit_bytes=32 * 1024 * 1024),
        cost_estimate=pl.CostEstimate(flops=_FLOPS, transcendentals=0,
                                      bytes_accessed=in_bytes + out_bytes),
    )(*args)


# -----------------------------------------------------------------------------
# Parameter init (torch-style layout) and host-side packing for the fused kernel
# -----------------------------------------------------------------------------
def init_params(key):
    ks = jax.random.split(key, 17)

    def lin(kw, kb, fan_in, fan_out):
        # torch Linear default init U(-1/sqrt(fan_in), +1/sqrt(fan_in)); stored as W^T.
        bound = fan_in ** -0.5
        w = jax.random.uniform(kw, (fan_in, fan_out), jnp.float32, -bound, bound)
        b = jax.random.uniform(kb, (1, fan_out), jnp.float32, -bound, bound)
        return w, b

    p = {}
    p["rep_l1_w"], p["rep_l1_b"] = lin(ks[0], ks[1], BERT_SIZE, HSIZE)
    p["rep_l2_w"], p["rep_l2_b"] = lin(ks[2], ks[3], HSIZE, THETA_OUT)
    p["rep_q_l1_w"], p["rep_q_l1_b"] = lin(ks[4], ks[5], BERT_SIZE, HSIZE)
    p["rep_q_l2_w"], p["rep_q_l2_b"] = lin(ks[6], ks[7], HSIZE, THETA_OUT)
    p["rep_d_l1_w"], p["rep_d_l1_b"] = lin(ks[8], ks[9], BERT_SIZE, HSIZE)
    p["rep_d_l2_w"], p["rep_d_l2_b"] = lin(ks[10], ks[11], HSIZE, THETA_OUT)
    p["res_w"], p["res_b"] = lin(ks[12], ks[13], BERT_SIZE, BERT_SIZE)
    p["cls_w"], p["cls_b"] = lin(ks[14], ks[15], BERT_SIZE, 1)
    # rep_theta: initialize_theta() samples N(vocab_mean, vocab_std); N(0, 0.02)-like.
    p["rep_theta"] = 0.02 * jax.random.normal(ks[16], (HLEN, BERT_SIZE), jnp.float32)
    return p


def pack_params(p):
    # theta duplicated + row-interleaved: row A -> theta[(A mod 2*HLEN) // 2].
    # Rows [0, 2*HLEN) serve the q prefix, rows [2*HLEN, 4*HLEN) the d prefix, and
    # within each block row A has parity A % 2 == the column-half of theta it reads.
    ridx = (jnp.arange(M_ROWS) % (2 * HLEN)) // 2
    theta2 = p["rep_theta"][ridx]                                   # (4*HLEN, H)

    # One wide layer-1 weight/bias for shared + query + doc branches.
    w1 = jnp.concatenate([p["rep_l1_w"], p["rep_q_l1_w"], p["rep_d_l1_w"]], axis=1)
    b1 = jnp.concatenate([p["rep_l1_b"], p["rep_q_l1_b"], p["rep_d_l1_b"]], axis=1)

    # Layer-2: stack [shared; query; doc] along K, then move the parity column-half
    # into K as well -> w2_big (6*HSIZE, HALF). Pure reindexing, no byte duplication.
    w2_packed = jnp.concatenate([p["rep_l2_w"], p["rep_q_l2_w"], p["rep_d_l2_w"]], axis=0)
    w2_big = jnp.concatenate([w2_packed[:, :HALF], w2_packed[:, HALF:]], axis=0)

    # Per-row bias in the final interleaved layout (qtheta/dtheta pick up both the
    # shared-branch and their own layer-2 bias).
    b2q = (p["rep_l2_b"] + p["rep_q_l2_b"]).reshape(THETA_OUT)
    b2d = (p["rep_l2_b"] + p["rep_d_l2_b"]).reshape(THETA_OUT)
    par = (jnp.arange(2 * HLEN) % 2)[:, None]                       # row parity
    cols = jnp.arange(HALF)[None, :]
    bias_big = jnp.concatenate([b2q[par * HALF + cols],
                                b2d[par * HALF + cols]], axis=0)    # (4*HLEN, HALF)

    # Mask selecting, per LHS row, its parity K-block and its branches (shared + q
    # for q rows, shared + d for d rows). Hoisted to the host (constant input).
    A = jnp.arange(M_ROWS)[:, None]
    K = jnp.arange(K2)[None, :]
    kblock = K // (3 * HSIZE)                                       # parity block
    branch = (K % (3 * HSIZE)) // HSIZE                             # 0=s, 1=q, 2=d
    is_q_row = A < 2 * HLEN
    keep = (kblock == (A % 2)) & ((branch == 0)
                                  | (is_q_row & (branch == 1))
                                  | (~is_q_row & (branch == 2)))
    mask = keep.astype(jnp.float32)                                 # (4*HLEN, 6*HSIZE)

    return {
        "theta2": theta2.astype(jnp.bfloat16),
        "w1": w1.astype(jnp.bfloat16),
        "b1": b1,
        "mask": mask,
        # Big layer-2 weights in bf16 (f32 accumulation in kernel). fp8 on v7x: TODO.
        "w2": w2_big.astype(jnp.bfloat16),
        "b2": bias_big,
        "res_w": p["res_w"],
        "res_b": p["res_b"],
        "cls_w_row": p["cls_w"].reshape(1, BERT_SIZE),
        "cls_b": p["cls_b"].reshape(1, 1),
    }


# -----------------------------------------------------------------------------
# Full forward (hot path is one fused Pallas call)
# -----------------------------------------------------------------------------
def p2_twin_bert_ranker_forward(packed, q_rep_last, d_rep_last):
    p_qrepr, p_drepr, score, feature = fused_head(packed, q_rep_last, d_rep_last)
    # TODO(synk): encode_bert() (external pretrained BERT) would consume
    # p_qrepr/p_drepr as prompt_hidden_states and produce q_reps/d_reps.
    return score, feature, p_qrepr, p_drepr


# -----------------------------------------------------------------------------
# Pure-JAX reference (original, unpacked f32 parameterization)
# -----------------------------------------------------------------------------
def reference_forward(p, q_rep_last, d_rep_last):
    th = p["rep_theta"]

    def mlp(w1, b1, w2, b2):
        return jnp.maximum(th @ w1 + b1, 0.0) @ w2 + b2

    theta = mlp(p["rep_l1_w"], p["rep_l1_b"], p["rep_l2_w"], p["rep_l2_b"])
    qtheta = theta + mlp(p["rep_q_l1_w"], p["rep_q_l1_b"], p["rep_q_l2_w"], p["rep_q_l2_b"])
    dtheta = theta + mlp(p["rep_d_l1_w"], p["rep_d_l1_b"], p["rep_d_l2_w"], p["rep_d_l2_b"])
    p_q = jnp.transpose(qtheta.reshape(HLEN * 2, -1, BERT_SIZE), (1, 0, 2))
    p_d = jnp.transpose(dtheta.reshape(HLEN * 2, -1, BERT_SIZE), (1, 0, 2))

    x1 = q_rep_last.mean(axis=1)
    x2 = d_rep_last.mean(axis=1)
    x = jnp.maximum(x1, x2)
    feature = x @ p["res_w"] + p["res_b"] + x
    score = feature @ p["cls_w"] + p["cls_b"]
    return score, feature, p_q, p_d


if __name__ == "__main__":
    key = jax.random.PRNGKey(0)
    kp, kq, kd = jax.random.split(key, 3)
    params = init_params(kp)
    packed = pack_params(params)

    # Synthetic last-layer BERT hidden states (stand-ins for q_reps[-1], d_reps[-1]).
    q_rep_last = jax.random.normal(kq, (BATCH, QLEN, BERT_SIZE), jnp.float32)
    d_rep_last = jax.random.normal(kd, (BATCH, DLEN, BERT_SIZE), jnp.float32)

    fwd = jax.jit(p2_twin_bert_ranker_forward)
    score, feature, p_qrepr, p_drepr = jax.block_until_ready(
        fwd(packed, q_rep_last, d_rep_last))

    ref_score, ref_feature, ref_pq, ref_pd = reference_forward(
        params, q_rep_last, d_rep_last)

    assert score.shape == (BATCH, 1)
    assert feature.shape == (BATCH, BERT_SIZE)
    assert p_qrepr.shape == (N_LAYERS, 2 * HLEN, BERT_SIZE)
    assert p_drepr.shape == (N_LAYERS, 2 * HLEN, BERT_SIZE)
    # score/feature path is pure f32; prefix path uses bf16 theta/w1/w2 storage.
    assert jnp.allclose(score, ref_score, atol=2e-3, rtol=2e-3)
    assert jnp.allclose(feature, ref_feature, atol=2e-3, rtol=2e-3)
    assert jnp.allclose(p_qrepr, ref_pq, atol=5e-3, rtol=5e-3)
    assert jnp.allclose(p_drepr, ref_pd, atol=5e-3, rtol=5e-3)

    print("KERNEL_OK")
</pallas_src>

<mosaic_0001>
module attributes {stable_mosaic.version = 11 : i64} {
  func.func @_fused_head_kernel(%arg0: i32, %arg1: memref<32x128xbf16, #tpu.memory_space<vmem>>, %arg2: memref<128x384xbf16, #tpu.memory_space<vmem>>, %arg3: memref<1x384xf32, #tpu.memory_space<vmem>>, %arg4: memref<32x768xf32, #tpu.memory_space<vmem>>, %arg5: memref<768x256xbf16, #tpu.memory_space<vmem>>, %arg6: memref<32x256xf32, #tpu.memory_space<vmem>>, %arg7: memref<2x8x128xf32, #tpu.memory_space<vmem>>, %arg8: memref<2x16x128xf32, #tpu.memory_space<vmem>>, %arg9: memref<128x128xf32, #tpu.memory_space<vmem>>, %arg10: memref<1x128xf32, #tpu.memory_space<vmem>>, %arg11: memref<1x128xf32, #tpu.memory_space<vmem>>, %arg12: memref<1x1xf32, #tpu.memory_space<vmem>>, %arg13: memref<2x16x128xf32, #tpu.memory_space<vmem>>, %arg14: memref<2x16x128xf32, #tpu.memory_space<vmem>>, %arg15: memref<2x1xf32, #tpu.memory_space<vmem>>, %arg16: memref<2x128xf32, #tpu.memory_space<vmem>>, %arg17: memref<32x768xbf16, #tpu.memory_space<vmem>>) attributes {dimension_semantics = [#tpu.dimension_semantics<arbitrary>], iteration_bounds = array<i64: 2>, scalar_prefetch = 0 : i64, scratch_operands = 1 : i64, tpu.core_type = #tpu.core_type<tc>, window_params = [{pipeline_mode = #tpu.pipeline_mode<synchronous>, transform_indices = @transform_0, window_bounds = array<i64: 32, 128>}, {pipeline_mode = #tpu.pipeline_mode<synchronous>, transform_indices = @transform_1, window_bounds = array<i64: 128, 384>}, {pipeline_mode = #tpu.pipeline_mode<synchronous>, transform_indices = @transform_2, window_bounds = array<i64: 1, 384>}, {pipeline_mode = #tpu.pipeline_mode<synchronous>, transform_indices = @transform_3, window_bounds = array<i64: 32, 768>}, {transform_indices = @transform_4, window_bounds = array<i64: 768, 256>}, {transform_indices = @transform_5, window_bounds = array<i64: 32, 256>}, {pipeline_mode = #tpu.pipeline_mode<synchronous>, transform_indices = @transform_6, window_bounds = array<i64: 2, 8, 128>}, {pipeline_mode = #tpu.pipeline_mode<synchronous>, transform_indices = @transform_7, window_bounds = array<i64: 2, 16, 128>}, {pipeline_mode = #tpu.pipeline_mode<synchronous>, transform_indices = @transform_8, window_bounds = array<i64: 128, 128>}, {pipeline_mode = #tpu.pipeline_mode<synchronous>, transform_indices = @transform_9, window_bounds = array<i64: 1, 128>}, {pipeline_mode = #tpu.pipeline_mode<synchronous>, transform_indices = @transform_10, window_bounds = array<i64: 1, 128>}, {pipeline_mode = #tpu.pipeline_mode<synchronous>, transform_indices = @transform_11, window_bounds = array<i64: 1, 1>}, {transform_indices = @transform_12, window_bounds = array<i64: 2, 16, 128>}, {transform_indices = @transform_13, window_bounds = array<i64: 2, 16, 128>}, {pipeline_mode = #tpu.pipeline_mode<synchronous>, transform_indices = @transform_14, window_bounds = array<i64: 2, 1>}, {pipeline_mode = #tpu.pipeline_mode<synchronous>, transform_indices = @transform_15, window_bounds = array<i64: 2, 128>}]} {
    %c0_i32 = arith.constant 0 : i32
    %0 = arith.cmpi eq, %arg0, %c0_i32 : i32
    %1 = arith.extui %0 : i1 to i32
    %c0_i32_0 = arith.constant 0 : i32
    %2 = arith.cmpi ne, %1, %c0_i32_0 : i32
    scf.if %2 {
      %c0_18 = arith.constant 0 : index
      %c0_19 = arith.constant 0 : index
      %27 = vector.load %arg1[%c0_18, %c0_19] : memref<32x128xbf16, #tpu.memory_space<vmem>>, vector<32x128xbf16>
      %c0_20 = arith.constant 0 : index
      %c0_21 = arith.constant 0 : index
      %28 = vector.load %arg2[%c0_20, %c0_21] : memref<128x384xbf16, #tpu.memory_space<vmem>>, vector<128x384xbf16>
      %cst_22 = arith.constant dense<0.000000e+00> : vector<32x384xf32>
      %29 = tpu.matmul %27, %28, %cst_22 {dimension_numbers = #tpu.dot_dimension_numbers<[1], [0], [0], [1], [0, 0, 1, 1], [], []>} : vector<32x128xbf16>, vector<128x384xbf16>, vector<32x384xf32> -> vector<32x384xf32>
      %c0_23 = arith.constant 0 : index
      %c0_24 = arith.constant 0 : index
      %30 = vector.load %arg3[%c0_23, %c0_24] : memref<1x384xf32, #tpu.memory_space<vmem>>, vector<1x384xf32>
      %31 = vector.broadcast %30 : vector<1x384xf32> to vector<32x384xf32>
      %32 = arith.addf %29, %31 : vector<32x384xf32>
      %cst_25 = arith.constant 0.000000e+00 : f32
      %33 = vector.broadcast %cst_25 : f32 to vector<32x384xf32>
      %34 = arith.maximumf %32, %33 : vector<32x384xf32>
      %c0_26 = arith.constant 0 : index
      %c0_27 = arith.constant 0 : index
      %35 = vector.load %arg4[%c0_26, %c0_27] : memref<32x768xf32, #tpu.memory_space<vmem>>, vector<32x384xf32>
      %36 = arith.mulf %34, %35 : vector<32x384xf32>
      %37 = arith.truncf %36 : vector<32x384xf32> to vector<32x384xbf16>
      %c0_28 = arith.constant 0 : index
      %c0_29 = arith.constant 0 : index
      %38 = vector.load %arg17[%c0_28, %c0_29] : memref<32x768xbf16, #tpu.memory_space<vmem>>, vector<32x384xbf16>
      tpu.vector_store %arg17[%c0_28, %c0_29], %37 {strides = array<i32>} : memref<32x768xbf16, #tpu.memory_space<vmem>>, vector<32x384xbf16>,
      %c0_30 = arith.constant 0 : index
      %c384 = arith.constant 384 : index
      %39 = vector.load %arg4[%c0_30, %c384] : memref<32x768xf32, #tpu.memory_space<vmem>>, vector<32x384xf32>
      %40 = arith.mulf %34, %39 : vector<32x384xf32>
      %41 = arith.truncf %40 : vector<32x384xf32> to vector<32x384xbf16>
      %c0_31 = arith.constant 0 : index
      %c384_32 = arith.constant 384 : index
      %42 = vector.load %arg17[%c0_31, %c384_32] : memref<32x768xbf16, #tpu.memory_space<vmem>>, vector<32x384xbf16>
      tpu.vector_store %arg17[%c0_31, %c384_32], %41 {strides = array<i32>} : memref<32x768xbf16, #tpu.memory_space<vmem>>, vector<32x384xbf16>,
    } else {
    }
    %c0 = arith.constant 0 : index
    %c0_1 = arith.constant 0 : index
    %3 = vector.load %arg17[%c0, %c0_1] : memref<32x768xbf16, #tpu.memory_space<vmem>>, vector<32x768xbf16>
    %c0_2 = arith.constant 0 : index
    %c0_3 = arith.constant 0 : index
    %4 = vector.load %arg5[%c0_2, %c0_3] : memref<768x256xbf16, #tpu.memory_space<vmem>>, vector<768x256xbf16>
    %cst = arith.constant dense<0.000000e+00> : vector<32x256xf32>
    %5 = tpu.matmul %3, %4, %cst {dimension_numbers = #tpu.dot_dimension_numbers<[1], [0], [0], [1], [0, 0, 1, 1], [], []>} : vector<32x768xbf16>, vector<768x256xbf16>, vector<32x256xf32> -> vector<32x256xf32>
    %c0_4 = arith.constant 0 : index
    %c0_5 = arith.constant 0 : index
    %6 = vector.load %arg6[%c0_4, %c0_5] : memref<32x256xf32, #tpu.memory_space<vmem>>, vector<32x256xf32>
    %7 = arith.addf %5, %6 : vector<32x256xf32>
    %8 = vector.extract_strided_slice %7 {offsets = [0, 0], sizes = [16, 128], strides = [1, 1]} : vector<32x256xf32> to vector<16x128xf32>
    %c0_6 = arith.constant 0 : index
    %c0_7 = arith.constant 0 : index
    %c0_8 = arith.constant 0 : index
    %9 = vector.load %arg13[%c0_6, %c0_7, %c0_8] : memref<2x16x128xf32, #tpu.memory_space<vmem>>, vector<1x16x128xf32>
    %10 = vector.shape_cast %9 : vector<1x16x128xf32> to vector<16x128xf32>
    %11 = vector.shape_cast %8 : vector<16x128xf32> to vector<1x16x128xf32>
    tpu.vector_store %arg13[%c0_6, %c0_7, %c0_8], %11 {strides = array<i32>} : memref<2x16x128xf32, #tpu.memory_space<vmem>>, vector<1x16x128xf32>,
    %12 = vector.extract_strided_slice %7 {offsets = [16, 0], sizes = [16, 128], strides = [1, 1]} : vector<32x256xf32> to vector<16x128xf32>
    %c0_9 = arith.constant 0 : index
    %c0_10 = arith.constant 0 : index
    %c0_11 = arith.constant 0 : index
    %13 = vector.load %arg14[%c0_9, %c0_10, %c0_11] : memref<2x16x128xf32, #tpu.memory_space<vmem>>, vector<1x16x128xf32>
    %14 = vector.shape_cast %13 : vector<1x16x128xf32> to vector<16x128xf32>
    %15 = vector.shape_cast %12 : vector<16x128xf32> to vector<1x16x128xf32>
    tpu.vector_store %arg14[%c0_9, %c0_10, %c0_11], %15 {strides = array<i32>} : memref<2x16x128xf32, #tpu.memory_space<vmem>>, vector<1x16x128xf32>,
    %16 = vector.extract_strided_slice %7 {offsets = [0, 128], sizes = [16, 128], strides = [1, 1]} : vector<32x256xf32> to vector<16x128xf32>
    %c1 = arith.constant 1 : index
    %c0_12 = arith.constant 0 : index
    %c0_13 = arith.constant 0 : index
    %17 = vector.load %arg13[%c1, %c0_12, %c0_13] : memref<2x16x128xf32, #tpu.memory_space<vmem>>, vector<1x16x128xf32>
    %18 = vector.shape_cast %17 : vector<1x16x128xf32> to vector<16x128xf32>
    %19 = vector.shape_cast %16 : vector<16x128xf32> to vector<1x16x128xf32>
    tpu.vector_store %arg13[%c1, %c0_12, %c0_13], %19 {strides = array<i32>} : memref<2x16x128xf32, #tpu.memory_space<vmem>>, vector<1x16x128xf32>,
    %20 = vector.extract_strided_slice %7 {offsets = [16, 128], sizes = [16, 128], strides = [1, 1]} : vector<32x256xf32> to vector<16x128xf32>
    %c1_14 = arith.constant 1 : index
    %c0_15 = arith.constant 0 : index
    %c0_16 = arith.constant 0 : index
    %21 = vector.load %arg14[%c1_14, %c0_15, %c0_16] : memref<2x16x128xf32, #tpu.memory_space<vmem>>, vector<1x16x128xf32>
    %22 = vector.shape_cast %21 : vector<1x16x128xf32> to vector<16x128xf32>
    %23 = vector.shape_cast %20 : vector<16x128xf32> to vector<1x16x128xf32>
    tpu.vector_store %arg14[%c1_14, %c0_15, %c0_16], %23 {strides = array<i32>} : memref<2x16x128xf32, #tpu.memory_space<vmem>>, vector<1x16x128xf32>,
    %c1_i32 = arith.constant 1 : i32
    %24 = arith.cmpi eq, %arg0, %c1_i32 : i32
    %25 = arith.extui %24 : i1 to i32
    %c0_i32_17 = arith.constant 0 : i32
    %26 = arith.cmpi ne, %25, %c0_i32_17 : i32
    scf.if %26 {
      %c0_18 = arith.constant 0 : index
      %c0_19 = arith.constant 0 : index
      %c0_20 = arith.constant 0 : index
      %27 = vector.load %arg7[%c0_18, %c0_19, %c0_20] : memref<2x8x128xf32, #tpu.memory_space<vmem>>, vector<2x8x128xf32>
      %cst_21 = arith.constant dense<0.000000e+00> : vector<2x128xf32>
      %28 = vector.multi_reduction <add>, %27, %cst_21 [1] : vector<2x8x128xf32> to vector<2x128xf32>
      %cst_22 = arith.constant 1.250000e-01 : f32
      %29 = vector.broadcast %cst_22 : f32 to vector<2x128xf32>
      %30 = arith.mulf %28, %29 : vector<2x128xf32>
      %c0_23 = arith.constant 0 : index
      %c0_24 = arith.constant 0 : index
      %c0_25 = arith.constant 0 : index
      %31 = vector.load %arg8[%c0_23, %c0_24, %c0_25] : memref<2x16x128xf32, #tpu.memory_space<vmem>>, vector<2x16x128xf32>
      %cst_26 = arith.constant dense<0.000000e+00> : vector<2x128xf32>
      %32 = vector.multi_reduction <add>, %31, %cst_26 [1] : vector<2x16x128xf32> to vector<2x128xf32>
      %cst_27 = arith.constant 6.250000e-02 : f32
      %33 = vector.broadcast %cst_27 : f32 to vector<2x128xf32>
      %34 = arith.mulf %32, %33 : vector<2x128xf32>
      %35 = arith.maximumf %30, %34 : vector<2x128xf32>
      %c0_28 = arith.constant 0 : index
      %c0_29 = arith.constant 0 : index
      %36 = vector.load %arg9[%c0_28, %c0_29] : memref<128x128xf32, #tpu.memory_space<vmem>>, vector<128x128xf32>
      %cst_30 = arith.constant dense<0.000000e+00> : vector<2x128xf32>
      %37 = tpu.matmul %35, %36, %cst_30 {dimension_numbers = #tpu.dot_dimension_numbers<[1], [0], [0], [1], [0, 0, 1, 1], [], []>} : vector<2x128xf32>, vector<128x128xf32>, vector<2x128xf32> -> vector<2x128xf32>
      %c0_31 = arith.constant 0 : index
      %c0_32 = arith.constant 0 : index
      %38 = vector.load %arg10[%c0_31, %c0_32] : memref<1x128xf32, #tpu.memory_space<vmem>>, vector<1x128xf32>
      %39 = vector.broadcast %38 : vector<1x128xf32> to vector<2x128xf32>
      %40 = arith.addf %37, %39 : vector<2x128xf32>
      %41 = arith.addf %40, %35 : vector<2x128xf32>
      %c0_33 = arith.constant 0 : index
      %c0_34 = arith.constant 0 : index
      %42 = vector.load %arg16[%c0_33, %c0_34] : memref<2x128xf32, #tpu.memory_space<vmem>>, vector<2x128xf32>
      tpu.vector_store %arg16[%c0_33, %c0_34], %41 {strides = array<i32>} : memref<2x128xf32, #tpu.memory_space<vmem>>, vector<2x128xf32>,
      %c0_35 = arith.constant 0 : index
      %c0_36 = arith.constant 0 : index
      %43 = vector.load %arg11[%c0_35, %c0_36] : memref<1x128xf32, #tpu.memory_space<vmem>>, vector<1x128xf32>
      %44 = vector.broadcast %43 : vector<1x128xf32> to vector<2x128xf32>
      %45 = arith.mulf %41, %44 : vector<2x128xf32>
      %cst_37 = arith.constant dense<0.000000e+00> : vector<2xf32>
      %46 = vector.multi_reduction <add>, %45, %cst_37 [1] : vector<2x128xf32> to vector<2xf32>
      %47 = vector.shape_cast %46 : vector<2xf32> to vector<2x1xf32>
      %c0_38 = arith.constant 0 : index
      %c0_39 = arith.constant 0 : index
      %48 = vector.load %arg12[%c0_38, %c0_39] : memref<1x1xf32, #tpu.memory_space<vmem>>, vector<1x1xf32>
      %49 = vector.broadcast %48 : vector<1x1xf32> to vector<2x1xf32>
      %50 = arith.addf %47, %49 : vector<2x1xf32>
      %c0_40 = arith.constant 0 : index
      %c0_41 = arith.constant 0 : index
      %51 = vector.load %arg15[%c0_40, %c0_41] : memref<2x1xf32, #tpu.memory_space<vmem>>, vector<2x1xf32>
      tpu.vector_store %arg15[%c0_40, %c0_41], %50 {strides = array<i32>} : memref<2x1xf32, #tpu.memory_space<vmem>>, vector<2x1xf32>,
    } else {
    }
    return
  }
  func.func @transform_0(%arg0: i32) -> (i32, i32) {
    %c0_i32 = arith.constant 0 : i32
    %c0_i32_0 = arith.constant 0 : i32
    %c0_i32_1 = arith.constant 0 : i32
    return %c0_i32, %c0_i32_0 : i32, i32
  }
  func.func @transform_1(%arg0: i32) -> (i32, i32) {
    %c0_i32 = arith.constant 0 : i32
    %c0_i32_0 = arith.constant 0 : i32
    %c0_i32_1 = arith.constant 0 : i32
    return %c0_i32, %c0_i32_0 : i32, i32
  }
  func.func @transform_2(%arg0: i32) -> (i32, i32) {
    %c0_i32 = arith.constant 0 : i32
    %c0_i32_0 = arith.constant 0 : i32
    %c0_i32_1 = arith.constant 0 : i32
    return %c0_i32, %c0_i32_0 : i32, i32
  }
  func.func @transform_3(%arg0: i32) -> (i32, i32) {
    %c0_i32 = arith.constant 0 : i32
    %c0_i32_0 = arith.constant 0 : i32
    %c0_i32_1 = arith.constant 0 : i32
    return %c0_i32, %c0_i32_0 : i32, i32
  }
  func.func @transform_4(%arg0: i32) -> (i32, i32) {
    %c0_i32 = arith.constant 0 : i32
    %c0_i32_0 = arith.constant 0 : i32
    return %c0_i32, %arg0 : i32, i32
  }
  func.func @transform_5(%arg0: i32) -> (i32, i32) {
    %c0_i32 = arith.constant 0 : i32
    %c0_i32_0 = arith.constant 0 : i32
    return %c0_i32, %arg0 : i32, i32
  }
  func.func @transform_6(%arg0: i32) -> (i32, i32, i32) {
    %c0_i32 = arith.constant 0 : i32
    %c0_i32_0 = arith.constant 0 : i32
    %c0_i32_1 = arith.constant 0 : i32
    %c0_i32_2 = arith.constant 0 : i32
    return %c0_i32, %c0_i32_0, %c0_i32_1 : i32, i32, i32
  }
  func.func @transform_7(%arg0: i32) -> (i32, i32, i32) {
    %c0_i32 = arith.constant 0 : i32
    %c0_i32_0 = arith.constant 0 : i32
    %c0_i32_1 = arith.constant 0 : i32
    %c0_i32_2 = arith.constant 0 : i32
    return %c0_i32, %c0_i32_0, %c0_i32_1 : i32, i32, i32
  }
  func.func @transform_8(%arg0: i32) -> (i32, i32) {
    %c0_i32 = arith.constant 0 : i32
    %c0_i32_0 = arith.constant 0 : i32
    %c0_i32_1 = arith.constant 0 : i32
    return %c0_i32, %c0_i32_0 : i32, i32
  }
  func.func @transform_9(%arg0: i32) -> (i32, i32) {
    %c0_i32 = arith.constant 0 : i32
    %c0_i32_0 = arith.constant 0 : i32
    %c0_i32_1 = arith.constant 0 : i32
    return %c0_i32, %c0_i32_0 : i32, i32
  }
  func.func @transform_10(%arg0: i32) -> (i32, i32) {
    %c0_i32 = arith.constant 0 : i32
    %c0_i32_0 = arith.constant 0 : i32
    %c0_i32_1 = arith.constant 0 : i32
    return %c0_i32, %c0_i32_0 : i32, i32
  }
  func.func @transform_11(%arg0: i32) -> (i32, i32) {
    %c0_i32 = arith.constant 0 : i32
    %c0_i32_0 = arith.constant 0 : i32
    %c0_i32_1 = arith.constant 0 : i32
    return %c0_i32, %c0_i32_0 : i32, i32
  }
  func.func @transform_12(%arg0: i32) -> (i32, i32, i32) {
    %c0_i32 = arith.constant 0 : i32
    %c0_i32_0 = arith.constant 0 : i32
    %c0_i32_1 = arith.constant 0 : i32
    return %arg0, %c0_i32, %c0_i32_0 : i32, i32, i32
  }
  func.func @transform_13(%arg0: i32) -> (i32, i32, i32) {
    %c0_i32 = arith.constant 0 : i32
    %c0_i32_0 = arith.constant 0 : i32
    %c0_i32_1 = arith.constant 0 : i32
    return %arg0, %c0_i32, %c0_i32_0 : i32, i32, i32
  }
  func.func @transform_14(%arg0: i32) -> (i32, i32) {
    %c0_i32 = arith.constant 0 : i32
    %c0_i32_0 = arith.constant 0 : i32
    %c0_i32_1 = arith.constant 0 : i32
    return %c0_i32, %c0_i32_0 : i32, i32
  }
  func.func @transform_15(%arg0: i32) -> (i32, i32) {
    %c0_i32 = arith.constant 0 : i32
    %c0_i32_0 = arith.constant 0 : i32
    %c0_i32_1 = arith.constant 0 : i32
    return %c0_i32, %c0_i32_0 : i32, i32
  }
}

</mosaic_0001>

<bundles_post_ra>
// kernel: p2_twin_bert_ranker_forward.1
= control target key start
LH: loop header
LB: loop body
LE: loop exit
PB: predicated region body
PF: predicated region fallthrough
CT: control target
= control target key end

     0   :  { %s3864_s0 = inlined_call_operand.hbm [shape: bf16[32,128], index: 0, kind: input, shape index: {}]   ;;  %s3865_s1 = inlined_call_operand.hbm [shape: bf16[128,384], index: 1, kind: input, shape index: {}]   ;;  %s3866_s2 = inlined_call_operand.vmem [shape: f32[1,384], index: 2, kind: input, shape index: {}]   ;;  %s3867_s3 = inlined_call_operand.hbm [shape: f32[32,768], index: 3, kind: input, shape index: {}]   ;;  %s3868_s4 = inlined_call_operand.hbm [shape: bf16[768,512], index: 4, kind: input, shape index: {}]   ;;  %s3869_s5 = inlined_call_operand.hbm [shape: f32[32,512], index: 5, kind: input, shape index: {}]   ;;  %s3870_s6 = inlined_call_operand.hbm [shape: f32[2,8,128], index: 6, kind: input, shape index: {}]   ;;  %s3871_s7 = inlined_call_operand.vmem [shape: f32[2,16,128], index: 7, kind: input, shape index: {}]   ;;  %s3872_s8 = inlined_call_operand.hbm [shape: f32[128,128], index: 8, kind: input, shape index: {}]   ;;  %s3873_s9 = inlined_call_operand.vmem [shape: f32[1,128], index: 9, kind: input, shape index: {}]   ;;  %s3874_s10 = inlined_call_operand.vmem [shape: f32[1,128], index: 10, kind: input, shape index: {}]   ;;  %s3875_s11 = inlined_call_operand.<no memory space> [shape: f32[1,1], index: 11, kind: input, shape index: {}]   ;;  %s3876_s12 = inlined_call_operand.hbm [shape: f32[4,16,128], index: 12, kind: output, shape index: {0}]   ;;  %s3877_s13 = inlined_call_operand.hbm [shape: f32[4,16,128], index: 13, kind: output, shape index: {1}]   ;;  %s3878_s14 = inlined_call_operand.vmem [shape: f32[2,1], index: 14, kind: output, shape index: {2}]   ;;  %s3879_s15 = inlined_call_operand.hbm [shape: f32[2,128], index: 15, kind: output, shape index: {3}]  }
   0x1   :  { %3906 = sst [smem:[#allocation33_spill]] %s3864_s0  ;;  %v21_v0 = vstv %s3875_s11 }
   0x2   :  { %3907 = sst [smem:[#allocation34_spill]] %s3865_s1  ;;  %22 = vst [vmem:[#allocation3] sm:$0x1] %v21_v0 }
   0x3   :  { %3908 = sst [smem:[#allocation35_spill]] %s3866_s2 }
   0x4   :  { %3909 = sst [smem:[#allocation36_spill]] %s3868_s4 }
   0x5   :  { %3910 = sst [smem:[#allocation37_spill]] %s3870_s6 }
   0x6   :  { %3911 = sst [smem:[#allocation38_spill]] %s3871_s7 }
   0x7   :  { %3912 = sst [smem:[#allocation39_spill]] %s3873_s9 }
   0x8   :  { %3913 = sst [smem:[#allocation40_spill]] %s3874_s10 }
   0x9   :  { %3914 = sst [smem:[#allocation41_spill]] %s3876_s12 }
   0xa   :  { %3915 = sst [smem:[#allocation42_spill]] %s3877_s13 }
   0xb   :  { %3916 = sst [smem:[#allocation43_spill]] %s3878_s14 }
   0xc   :  { %3917 = sst [smem:[#allocation44_spill]] %s3879_s15 }
   0xd   :  { %23 = vsyncpa [#allocation5], 0 }
   0xe   :  { %24 = vsyncpa [#allocation8], 0 }
   0xf   :  { %25 = vsyncpa [#allocation11], 0 }
  0x10   :  { %27 = vsyncpa [#allocation11 + $0x1], 0 }
  0x11   :  { %28 = vsyncpa [#allocation14], 0 }
  0x12   :  { %29 = vsyncpa [#allocation6], 0 }
  0x13   :  { %31 = vsyncpa [#allocation6 + $0x1], 0 }
  0x14   :  { %32 = vsyncpa [#allocation18], 0 }
  0x15   :  { %34 = vsyncpa [#allocation18 + $0x1], 0  ;;  %s3282_s20 = smov 0   ;;  %s3284_s21 = smov 0  }
  0x16   :  { %s3286_s22 = smov 0   ;;  %s3288_s23 = smov 0  }
  0x17 LB: > { %3918 = sst [smem:[#allocation27_spill]] %s3158_s20  ;;  %s3303_s11 = sadd.s32 4294967295, %s3170_s23   ;;  %s3170_s23 = sphi %s3288_s23, %s3973_s23   ;;  %s3166_s22 = sphi %s3286_s22, %s3975_s22   ;;  %s3162_s21 = sphi %s3284_s21, %s3977_s21   ;;  %s3158_s20 = sphi %s3282_s20, %s3976_s20  }
  0x18   : > { %3919 = sst [smem:[#allocation28_spill]] %s3166_s22  ;;  %s3880_s24 = sadd.s32 4294967294, %s3170_s23  }
  0x19   : > { %p144_p0 = scmp.ne.s32.totalorder %s3162_s21, %s3158_s20  ;;  %p3884_p1 = scmp.eq.s32.totalorder %s3303_s11, 0 }
  0x1a   : > { %p326_p3 = scmp.eq.s32.totalorder %s3880_s24, 1  ;;  %p2187_p5 = scmp.ge.s32.totalorder %s3170_s23, 1 }
  0x1b   : > { %p3314_p4 = por %p3884_p1, %p144_p0  ;;  %p401_p7 = scmp.lt.s32.totalorder %s3170_s23, 3 }
  0x1c   : > { %p3319_p6 = por %p326_p3, %p144_p0  ;;  %s3172_s28 = smov [#allocation7]  }
  0x1d   : > { %s3920_s25 = scalar_select %p3314_p4, 1, 0 }
  0x1e   : > { %s3921_s26 = scalar_select %p3319_p6, 1, 0 }
  0x1f   : > { %p3325_p9 = pnand %p2187_p5, %p401_p7  ;;  %s426_s29 = sshll.u32 %s3172_s28, 4  ;;  %s3329_s29 = int_to_ptr.vmem [resolvable:$true] %s426_s29 }
  0x20   : > { %3922 = sst [smem:[#allocation29_spill]] %s3921_s26  ;;  %s3173_s16 = smov [#allocation13]  }
  0x21   : > { %s3923_s27 = scalar_select %p3325_p9, 1, 0 }
  0x22   : > { %p2553_p10 = pneg %p3325_p9  ;;  %s455_s17 = sshll.u32 %s3173_s16, 4  ;;  %s3340_s17 = int_to_ptr.vmem [resolvable:$true] %s455_s17 }
  0x23   : > { %s3925_s1 = sld [smem:[#allocation34_spill]] }
  0x24   : > { %p3336_p12 = pnand %p2553_p10, %p3884_p1 }
  0x26   : > { %s3924_s30 = scalar_select %p3336_p12, 1, 0 }
  0x27   : > { %p3350_p0 = pneg %p3336_p12 }
  0x29   : > { %s2830_s24 = scalar_lea.hbm %s3925_s1, 3072 }
  0x2a   : > { %p2831_p13 = scmp.ne.s32.totalorder %s3925_s1, %s2830_s24  ;;  %p2837_p7 = scmp.lt.u32.totalorder %s2830_s24, %s3925_s1 }
  0x2c   : > { %p2833_p3 = pnand %p3350_p0, %p2831_p13 }
  0x2e   : > { %p2834_p5 = pneg %p2833_p3 }
  0x30   : > { %p2839_p10 = pnand %p2837_p7, %p2834_p5 }
  0x32   : > { %2842 = shalt.err (!%p2839_p10)
}
  0x33   : > { %s2843_s26 = scalar_lea.vmem %s3329_s29, 3072  ;;  %p2851_p2 = scmp.lt.s32.totalorder %s3329_s29, %s3329_s29 }
  0x34   : > { %p2844_p11 = scmp.ne.s32.totalorder %s3329_s29, %s2843_s26  ;;  %p2852_p6 = scmp.lt.s32.totalorder %s2843_s26, %s2843_s26 }
  0x36   : > { %p2846_p8 = pnand %p2844_p11, %p3350_p0  ;;  %p2853_p13 = por %p2852_p6, %p2851_p2 }
  0x38   : > { %p2847_p1 = pneg %p2846_p8 }
  0x3a   : > { %p2854_p3 = pnand %p2853_p13, %p2847_p1 }
  0x3c   : > { %2857 = shalt.err (!%p2854_p3)
}
  0x3d   : > { %s3174_s18 = smov 192   ;;  %s3175_s15 = smov 12  }
  0x3e   : > { %2559 = dma.hbm_to_vmem [thread:$0]  (!%p3336_p12), %s3925_s1, 3072, %s3329_s29, [#allocation8], %s3174_s18, %s3174_s18, %s3175_s15  }
  0x3f   : > { %s3927_s6 = sld [smem:[#allocation37_spill]] }
  0x45   : > { %s2858_s12 = scalar_lea.hbm %s3927_s6, 256 }
  0x46   : > { %p2859_p2 = scmp.ne.s32.totalorder %s3927_s6, %s2858_s12  ;;  %p2865_p8 = scmp.lt.u32.totalorder %s2858_s12, %s3927_s6 }
  0x48   : > { %p2861_p1 = pnand %p2859_p2, %p3350_p0 }
  0x4a   : > { %p2862_p6 = pneg %p2861_p1 }
  0x4c   : > { %p2867_p11 = pnand %p2865_p8, %p2862_p6 }
  0x4e   : > { %2870 = shalt.err (!%p2867_p11)
}
  0x4f   : > { %s2871_s29 = scalar_lea.vmem %s3340_s17, 256  ;;  %p2879_p13 = scmp.lt.s32.totalorder %s3340_s17, %s3340_s17 }
  0x50   : > { %p2872_p5 = scmp.ne.s32.totalorder %s3340_s17, %s2871_s29  ;;  %p2880_p3 = scmp.lt.s32.totalorder %s2871_s29, %s2871_s29 }
  0x52   : > { %p2874_p7 = pnand %p2872_p5, %p3350_p0  ;;  %p2881_p2 = por %p2880_p3, %p2879_p13 }
  0x54   : > { %p2875_p10 = pneg %p2874_p7 }
  0x56   : > { %p2882_p1 = pnand %p2881_p2, %p2875_p10 }
  0x58   : > { %2885 = shalt.err (!%p2882_p1)
}
  0x59   : > { %s3887_s13 = smov 128   ;;  %s3889_s10 = smov 8  }
  0x5a   : > { %2565 = dma.hbm_to_vmem [thread:$0]  (!%p3336_p12), %s3927_s6, 256, %s3340_s17, [#allocation14], %s3887_s13, %s3887_s13, %s3889_s10  }
  0x5b   : > { %s3398_s18 = sadd.s32 1, %s3170_s23   ;;  %s131_s24 = sadd.s32 1, %s3166_s22 }
  0x5c   : > { %3928 = sst [smem:[#allocation30_spill]] %s3398_s18  ;;  %s128_s15 = ssub.s32 %s3170_s23, %s3398_s18 }
  0x5d   : > { %p129_p6 = scmp.eq.s32.totalorder %s128_s15, 0  ;;  %p138_p8 = scmp.ne.s32.totalorder %s3166_s22, %s3162_s21 }
  0x5e   : > { %p139_p11 = scmp.eq.s32.totalorder %s3170_s23, 0  ;;  %p3930_p7 = scmp.eq.s32.totalorder %s3303_s11, 1 }
  0x5f   : > { %s3407_s19 = scalar_select %p129_p6, %s3166_s22, %s131_s24  }
  0x60   : > { %p140_p5 = por %p139_p11, %p138_p8  ;;  %p3411_p10 = por %p3930_p7, %p138_p8 }
  0x61   : > { %3929 = sst [smem:[#allocation31_spill]] %s3407_s19  ;;  %p2588_p13 = scmp.lt.s32.totalorder %s3170_s23, 2 }
  0x62   : > { %s3931_s28 = scalar_select %p3411_p10, 1, 0 }
  0x63   : > { %s494_s16 = sand.u32 1, %s3170_s23   ;;  %s496_s26 = sand.u32 1, %s3166_s22  }
  0x64   : > { %3932 = sst [smem:[#allocation32_spill]] %s3931_s28  ;;  %s2519_s17 = smul.u32 768, %s496_s26 }
  0x65   : > { %s2351_s29 = sshll.u32 %s3170_s23, 7  ;;  %s3933_s4 = sld [smem:[#allocation36_spill]] }
  0x66   : > { %p3424_p3 = pnand %p2588_p13, %p140_p5  ;;  %s498_s13 = scalar_lea.vmem [#allocation10], %s2519_s17 }
  0x67   : > { %s505_s10 = sshll.u32 %s498_s13, 4  ;;  %s3430_s1 = sshll.u32 %s496_s26, 6  ;;  %s3428_s10 = int_to_ptr.vmem [resolvable:$true] %s505_s10 }
  0x68   : > { %s3934_s24 = scalar_select %p3424_p3, 1, 0 }
  0x69   : > { %s3432_s6 = scalar_lea.sflag [#allocation11], %s494_s16  ;;  %p3902_p1 = pneg %p3424_p3 }
  0x6b   : > { %s3422_s15 = scalar_lea.hbm %s3933_s4, %s2351_s29  ;;  %s2891_s19 = scalar_lea.hbm %s3933_s4, 24576 }
  0x6c   : > { %s2886_s29 = scalar_lea.hbm %s3422_s15, 12288  ;;  %p2892_p11 = scmp.lt.u32.totalorder %s3422_s15, %s3933_s4 }
  0x6d   : > { %p2887_p2 = scmp.ne.s32.totalorder %s3422_s15, %s2886_s29  ;;  %p2893_p5 = scmp.lt.u32.totalorder %s2891_s19, %s2886_s29 }
  0x6e   : > { %p2895_p13 = scmp.lt.u32.totalorder %s2886_s29, %s3422_s15 }
  0x6f   : > { %p2889_p6 = pnand %p3902_p1, %p2887_p2  ;;  %p2894_p7 = por %p2893_p5, %p2892_p11 }
  0x71   : > { %p2890_p8 = pneg %p2889_p6  ;;  %p2896_p10 = por %p2895_p13, %p2894_p7 }
  0x73   : > { %p2897_p4 = pnand %p2896_p10, %p2890_p8 }
  0x75   : > { %2900 = shalt.err (!%p2897_p4)
}
  0x76   : > { %s2901_s16 = scalar_lea.vmem %s3428_s10, 12288  ;;  %s3178_s26 = smov [#allocation10]  }
  0x77   : > { %p2902_p2 = scmp.ne.s32.totalorder %s3428_s10, %s2901_s16  ;;  %s2906_s12 = sshll.u32 %s3178_s26, 4  ;;  %s2907_s12 = int_to_ptr.vmem [resolvable:$false] %s2906_s12 }
  0x78   : > { %s2908_s14 = scalar_lea.vmem %s2907_s12, 24576  ;;  %p2909_p12 = scmp.lt.s32.totalorder %s3428_s10, %s2907_s12 }
  0x79   : > { %p2904_p6 = pnand %p2902_p2, %p3902_p1  ;;  %p2910_p11 = scmp.lt.s32.totalorder %s2908_s14, %s2901_s16 }
  0x7b   : > { %p2905_p9 = pneg %p2904_p6  ;;  %p2911_p5 = por %p2910_p11, %p2909_p12 }
  0x7d   : > { %p2912_p7 = pnand %p2911_p5, %p2905_p9 }
  0x7f   : > { %2915 = shalt.err (!%p2912_p7)
}
  0x80   : > { %s3903_s19 = smov 256   ;;  %s3935_s29 = smov 8  }
  0x81   : > { %s3936_s17 = smov 128   ;;  %s519_s13 = scalar_lea.vmem [#allocation12], %s3430_s1 }
  0x82   : > { %2572 = dma.hbm_to_vmem [thread:$0]  (!%p3424_p3), %s3422_s15, 12288, %s3428_s10, %s3432_s6, %s3903_s19, %s3936_s17, %s3935_s29  }
  0x83   : > { %s3464_s26 = sshll.u32 %s519_s13, 4  ;;  %s3180_s12 = smov [#allocation4]   ;;  %s3509_s26 = int_to_ptr.vmem [resolvable:$true] %s3464_s26 }
  0x84   : > { %s413_s16 = sshll.u32 %s3180_s12, 4  ;;  %s3937_s0 = sld [smem:[#allocation33_spill]]  ;;  %s414_s16 = int_to_ptr.vmem [resolvable:$true] %s413_s16 }
  0x8a   : > { %s2916_s22 = scalar_lea.hbm %s3937_s0, 256 }
  0x8b   : > { %p2917_p4 = scmp.ne.s32.totalorder %s3937_s0, %s2916_s22  ;;  %p2923_p10 = scmp.lt.u32.totalorder %s2916_s22, %s3937_s0 }
  0x8d   : > { %p2919_p9 = pnand %p2917_p4, %p3350_p0 }
  0x8f   : > { %p2920_p12 = pneg %p2919_p9 }
  0x91   : > { %p2925_p8 = pnand %p2923_p10, %p2920_p12 }
  0x93   : > { %2928 = shalt.err (!%p2925_p8)
}
  0x94   : > { %s2929_s1 = scalar_lea.vmem %s414_s16, 256  ;;  %p2937_p11 = scmp.lt.s32.totalorder %s414_s16, %s414_s16 }
  0x95   : > { %p2930_p13 = scmp.ne.s32.totalorder %s414_s16, %s2929_s1  ;;  %p2938_p5 = scmp.lt.s32.totalorder %s2929_s1, %s2929_s1 }
  0x97   : > { %p2932_p2 = pnand %p2930_p13, %p3350_p0  ;;  %p2939_p7 = por %p2938_p5, %p2937_p11 }
  0x99   : > { %p2933_p6 = pneg %p2932_p2 }
  0x9b   : > { %p2940_p1 = pnand %p2939_p7, %p2933_p6 }
  0x9d   : > { %2943 = shalt.err (!%p2940_p1)
}
  0x9e   : > { %s3181_s4 = smov 64   ;;  %s3182_s10 = smov 4  }
  0x9f   : > { %p3938_p4 = scmp.ne.s32.totalorder %s3924_s30, 0  ;;  %s3183_s22 = smov [#allocation9]  }
  0xa0   : > { %s442_s18 = sshll.u32 %s3183_s22, 4  ;;  %s2944_s13 = scalar_lea.hbm %s3867_s3, 3072  ;;  %s443_s18 = int_to_ptr.vmem [resolvable:$true] %s442_s18 }
  0xa1   : > { %2556 = dma.hbm_to_vmem [thread:$0]  (!%p3938_p4), %s3937_s0, 256, %s414_s16, [#allocation5], %s3181_s4, %s3181_s4, %s3182_s10  }
  0xa2   : > { %p2945_p1 = scmp.ne.s32.totalorder %s3867_s3, %s2944_s13  ;;  %p2951_p10 = scmp.lt.u32.totalorder %s2944_s13, %s3867_s3 }
  0xa4   : > { %p2947_p9 = pnand %p2945_p1, %p3350_p0 }
  0xa6   : > { %p2948_p12 = pneg %p2947_p9 }
  0xa8   : > { %p2953_p8 = pnand %p2951_p10, %p2948_p12 }
  0xaa   : > { %2956 = shalt.err (!%p2953_p8)
}
  0xab   : > { %s2957_s16 = scalar_lea.vmem %s443_s18, 3072  ;;  %p2965_p11 = scmp.lt.s32.totalorder %s443_s18, %s443_s18 }
  0xac   : > { %p2958_p13 = scmp.ne.s32.totalorder %s443_s18, %s2957_s16  ;;  %p2966_p5 = scmp.lt.s32.totalorder %s2957_s16, %s2957_s16 }
  0xae   : > { %p2960_p2 = pnand %p2958_p13, %p3350_p0  ;;  %p2967_p7 = por %p2966_p5, %p2965_p11 }
  0xb0   : > { %p2961_p6 = pneg %p2960_p2 }
  0xb2   : > { %p2968_p3 = pnand %p2967_p7, %p2961_p6 }
  0xb4   : > { %2971 = shalt.err (!%p2968_p3)
}
  0xb5   : > { %s3184_s4 = smov 768   ;;  %s3185_s19 = smov 48  }
  0xb6   : > { %2562 = dma.hbm_to_vmem [thread:$0]  (!%p3938_p4), %s3867_s3, 3072, %s443_s18, [#allocation8], %s3184_s4, %s3184_s4, %s3185_s19  }
  0xb7   : > { %s2352_s9 = sshll.u32 %s3170_s23, 8  ;;  %s3186_s22 = smov [#allocation15]  }
  0xb8   : > { %s471_s28 = sshll.u32 %s3186_s22, 4  ;;  %s3506_s12 = scalar_lea.hbm %s3869_s5, %s2352_s9  ;;  %s472_s28 = int_to_ptr.vmem [resolvable:$true] %s471_s28 }
  0xb9   : > { %s2972_s16 = scalar_lea.hbm %s3872_s8, 2048 }
  0xba   : > { %p2973_p3 = scmp.ne.s32.totalorder %s3872_s8, %s2972_s16  ;;  %p2979_p12 = scmp.lt.u32.totalorder %s2972_s16, %s3872_s8 }
  0xbc   : > { %p2975_p1 = pnand %p2973_p3, %p3350_p0 }
  0xbe   : > { %p2976_p9 = pneg %p2975_p1 }
  0xc0   : > { %p2981_p10 = pnand %p2979_p12, %p2976_p9 }
  0xc2   : > { %2984 = shalt.err (!%p2981_p10)
}
  0xc3   : > { %s2985_s19 = scalar_lea.vmem %s472_s28, 2048  ;;  %p2993_p6 = scmp.lt.s32.totalorder %s472_s28, %s472_s28 }
  0xc4   : > { %p2986_p8 = scmp.ne.s32.totalorder %s472_s28, %s2985_s19  ;;  %p2994_p11 = scmp.lt.s32.totalorder %s2985_s19, %s2985_s19 }
  0xc6   : > { %p2988_p13 = pnand %p2986_p8, %p3350_p0  ;;  %p2995_p5 = por %p2994_p11, %p2993_p6 }
  0xc8   : > { %p2989_p2 = pneg %p2988_p13 }
  0xca   : > { %p2996_p7 = pnand %p2995_p5, %p2989_p2 }
  0xcc   : > { %2999 = shalt.err (!%p2996_p7)
}
  0xcd   : > { %2568 = dma.hbm_to_vmem [thread:$0]  (!%p3938_p4), %s3872_s8, 2048, %s472_s28, [#allocation14], %s3936_s17, %s3936_s17, %s3935_s29  }
  0xce   : > { %s3000_s20 = scalar_lea.hbm %s3506_s12, 1024  ;;  %p3939_p3 = scmp.ne.s32.totalorder %s3934_s24, 0 }
  0xcf   : > { %p3001_p0 = scmp.ne.s32.totalorder %s3506_s12, %s3000_s20  ;;  %s3005_s7 = scalar_lea.hbm %s3869_s5, 2048 }
  0xd0   : > { %p3940_p1 = pneg %p3939_p3  ;;  %p3006_p10 = scmp.lt.u32.totalorder %s3506_s12, %s3869_s5 }
  0xd1   : > { %p3007_p8 = scmp.lt.u32.totalorder %s3005_s7, %s3000_s20  ;;  %p3009_p2 = scmp.lt.u32.totalorder %s3000_s20, %s3506_s12 }
  0xd2   : > { %p3003_p9 = pnand %p3001_p0, %p3940_p1 }
  0xd3   : > { %p3008_p13 = por %p3007_p8, %p3006_p10 }
  0xd4   : > { %p3004_p12 = pneg %p3003_p9 }
  0xd5   : > { %p3010_p6 = por %p3009_p2, %p3008_p13 }
  0xd7   : > { %p3011_p11 = pnand %p3010_p6, %p3004_p12 }
  0xd9   : > { %3014 = shalt.err (!%p3011_p11)
}
  0xda   : > { %s3015_s29 = scalar_lea.vmem %s3509_s26, 1024  ;;  %p3941_p5 = pmov %p3940_p1 }
  0xdb   : > { %p3016_p4 = scmp.ne.s32.totalorder %s3509_s26, %s3015_s29  ;;  %s3187_s17 = smov [#allocation12]  }
  0xdc   : > { %s3020_s28 = sshll.u32 %s3187_s17, 4  ;;  %s3021_s28 = int_to_ptr.vmem [resolvable:$false] %s3020_s28 }
  0xdd   : > { %p3018_p7 = pnand %p3016_p4, %p3941_p5  ;;  %s3022_s15 = scalar_lea.vmem %s3021_s28, 2048 }
  0xde   : > { %p3023_p1 = scmp.lt.s32.totalorder %s3509_s26, %s3021_s28  ;;  %p3024_p9 = scmp.lt.s32.totalorder %s3022_s15, %s3015_s29 }
  0xdf   : > { %p3019_p0 = pneg %p3018_p7 }
  0xe0   : > { %p3025_p10 = por %p3024_p9, %p3023_p1 }
  0xe2   : > { %p3026_p8 = pnand %p3025_p10, %p3019_p0 }
  0xe4   : > { %3029 = shalt.err (!%p3026_p8)
}
  0xe5   : > { %s3188_s13 = smov 512   ;;  %s3189_s14 = smov 16  }
  0xe6   : > { %s3942_s1 = smov 256   ;;  %p3943_p12 = scmp.ne.s32.totalorder %s3923_s27, 0 }
  0xe7   : > { %2575 = dma.hbm_to_vmem [thread:$0]  (!%p3939_p3), %s3506_s12, 1024, %s3509_s26, %s3432_s6, %s3188_s13, %s3942_s1, %s3189_s14  }
  0xe8   : > { %538 = sbr.rel (%p3943_p12) target bundleno = 1330 (0x532), region = 68  ;;  %p3944_p13 = scmp.eq.s32.totalorder (!%p3943_p12), %s3303_s11, 0 }
  0xef   : > { %3129 = dma.done.wait (%p3944_p13), [#allocation5], 256   ;;  %p3945_p2 = pmov %p3944_p13 }
  0xf1   : > { %3131 = vsyncadd (%p3945_p2), [#allocation5], 4294967040  ;;  %p3946_p6 = pmov %p3945_p2 }
  0xf2   : > { %p3947_p11 = pmov %p3945_p2 }
  0xf3   : > { %3133 = dma.done.wait (%p3946_p6), [#allocation8], 6144  }
  0xf4   : > { %3135 = vsyncadd (%p3947_p11), [#allocation8], 4294961152  ;;  %s552_s6 = sand.u32 1, %s3303_s11   ;;  %s3569_s24 = sand.u32 1, %s3162_s21  }
  0xf5   : > { %s2520_s27 = smul.u32 768, %s3569_s24  ;;  %s553_s26 = scalar_lea.sflag [#allocation11], %s552_s6 }
  0xf6   : > { %p3948_p3 = scmp.ne.s32.totalorder %s3920_s25, 0 }
  0xf7   : > { %s3574_s12 = scalar_lea.vmem [#allocation10], %s2520_s27 }
  0xf8   : > { %3137 = dma.done.wait (%p3948_p3), %s553_s26, 13312  }
  0xf9   : > { %3139 = vsyncadd (%p3948_p3), %s553_s26, 4294953984  ;;  %s2203_s16 = sshll.u32 %s3569_s24, 6  ;;  %p3949_p4 = pmov %p3945_p2 }
  0xfa   : > { %s3581_s18 = scalar_lea.vmem [#allocation12], %s2203_s16 }
  0xfb   : > { %3141 = dma.done.wait (%p3949_p4), [#allocation14], 2304   ;;  %p3950_p5 = pmov %p3945_p2 }
  0xfc   : > { %s2206_s4 = sshll.u32 %s3569_s24, 5  ;;  %p3951_p7 = scmp.ne.s32.totalorder %s3303_s11, 0 }
  0xfd   : > { %3143 = vsyncadd (%p3950_p5), [#allocation14], 4294964992  ;;  %s3588_s19 = scalar_lea.vmem [#allocation16], %s2206_s4  ;;  %s3590_s0 = scalar_lea.vmem [#allocation17], %s2206_s4  ;;  %v2652_v1 = vld [vmem:[#allocation7 + $0x4] ss:$12 sps:$4 sm:$0xff] (!%p3951_p7)   ;;  %v677_v28 = vlaneseq (!%p3951_p7) }
  0xfe   : > { %638 = sbr.rel (%p3951_p7) target bundleno = 519 (0x207), region = 100  ;;  %v2654_v2 = vld [vmem:[#allocation7] ss:$12 sps:$4 sm:$0xff] (!%p3951_p7)   ;;  %v3190_v3 = vmov (!%p3951_p7), 0   ;;  %832 = vmatprep.subr.bf16.mxu0 (!%p3951_p7), %v2652_v1  ;;  %v2655_v4 = vld [vmem:[#allocation7 + $0x1c] ss:$12 sps:$4 sm:$0xff] (!%p3951_p7)  }
  0xff   : > { %864 = vmatprep.mubr.bf16.mxu0 (!%p3951_p7), %v3190_v3  ;;  %v2657_v5 = vld [vmem:[#allocation7 + $0x18] ss:$12 sps:$4 sm:$0xff] (!%p3951_p7)   ;;  %833 = vmatpush1.bf16.msra.mxu0 (!%p3951_p7), %v2654_v2  ;;  %v2658_v6 = vld [vmem:[#allocation7 + $0x8] ss:$12 sps:$4 sm:$0xff] (!%p3951_p7)   ;;  %v2662_v8 = vld [vmem:[#allocation7 + $0x20] ss:$12 sps:$4 sm:$0xff] (!%p3951_p7)  }
 0x100   : > { %834 = vmatprep.subr.bf16.mxu0 (!%p3951_p7), %v2655_v4  ;;  %v2659_v7 = vld [vmem:[#allocation7 + $0x34] ss:$12 sps:$4 sm:$0xff] (!%p3951_p7)   ;;  %2384 = vmatprep.subr.bf16.mxu1 (!%p3951_p7), %v2658_v6  ;;  %v2661_v9 = vld [vmem:[#allocation7 + $0x30] ss:$12 sps:$4 sm:$0xff] (!%p3951_p7)   ;;  %v2663_v10 = vld [vmem:[#allocation7 + $0x4c] ss:$12 sps:$4 sm:$0xff] (!%p3951_p7)  }
 0x101   : > { %2385 = vmatpush3.bf16.msra.mxu1 (!%p3951_p7), %v2658_v6  ;;  %v2666_v11 = vld [vmem:[#allocation7 + $0x38] ss:$12 sps:$4 sm:$0xff] (!%p3951_p7)   ;;  %v2665_v12 = vld [vmem:[#allocation7 + $0x48] ss:$12 sps:$4 sm:$0xff] (!%p3951_p7)   ;;  %v2670_v13 = vld [vmem:[#allocation7 + $0x50] ss:$12 sps:$4 sm:$0xff] (!%p3951_p7)  }
 0x102   : > { %2386 = vmatprep.subr.bf16.mxu1 (!%p3951_p7), %v2662_v8  ;;  %v2667_v14 = vld [vmem:[#allocation7 + $0x64] ss:$12 sps:$4 sm:$0xff] (!%p3951_p7)   ;;  %v2669_v15 = vld [vmem:[#allocation7 + $0x60] ss:$12 sps:$4 sm:$0xff] (!%p3951_p7)   ;;  %v2674_v16 = vld [vmem:[#allocation7 + $0x68] ss:$12 sps:$4 sm:$0xff] (!%p3951_p7)  }
 0x103   : > { %835 = vmatpush1.bf16.msra.mxu0 (!%p3951_p7), %v2657_v5  ;;  %v2671_v17 = vld [vmem:[#allocation7 + $0x7c] ss:$12 sps:$4 sm:$0xff] (!%p3951_p7)   ;;  %v2673_v18 = vld [vmem:[#allocation7 + $0x78] ss:$12 sps:$4 sm:$0xff] (!%p3951_p7)   ;;  %v2683_v19 = vld [vmem:[#allocation4] sm:$0xff] (!%p3951_p7)   ;;  %v678_v29 = vshrl.u32 (!%p3951_p7), %v677_v28, 7 }
 0x104   : > { %836 = vmatprep.subr.bf16.mxu0 (!%p3951_p7), %v2659_v7  ;;  %v2678_v20 = vld [vmem:[#allocation7 + $0x80] ss:$12 sps:$4 sm:$0xff] (!%p3951_p7)   ;;  %2400 = vmatprep.mubr.bf16.mxu1 (!%p3951_p7), %v2683_v19  ;;  %v2677_v22 = vld [vmem:[#allocation7 + $0x90] ss:$12 sps:$4 sm:$0xff] (!%p3951_p7)   ;;  %v2682_v23 = vld [vmem:[#allocation7 + $0x98] ss:$12 sps:$4 sm:$0xff] (!%p3951_p7)  }
 0x105   : > { %2387 = vmatpush3.bf16.msra.mxu1 %v2662_v8  ;;  %v2675_v21 = vld [vmem:[#allocation7 + $0x94] ss:$12 sps:$4 sm:$0xff]   ;;  %v2679_v24 = vld [vmem:[#allocation7 + $0xac] ss:$12 sps:$4 sm:$0xff]   ;;  %v2684_v26 = vld [vmem:[#allocation7 + $0xb0] ss:$12 sps:$4 sm:$0xff]  }
 0x106   : > { %2388 = vmatprep.subr.bf16.mxu1 %v2666_v11  ;;  %v2681_v25 = vld [vmem:[#allocation7 + $0xa8] ss:$12 sps:$4 sm:$0xff]   ;;  %v2685_v27 = vld [vmem:[#allocation4 + $0x8] sm:$0xff]   ;;  %v679_v30 = vsub.s32 0, %v678_v29  ;;  %s3952_s20 = sld [smem:[#allocation35_spill]]  ;;  %v683_v32 = vsub.s32 1, %v678_v29 }
 0x107   : > { %837 = vmatpush1.bf16.msra.mxu0 %v2661_v9  ;;  %v687_v33 = vsub.s32 2, %v678_v29  ;;  %v946_v43 = vld [vmem:[#allocation9] sm:$0xff]  ;;  %v982_v44 = vld [vmem:[#allocation9 + $0x18] sm:$0xff]  ;;  %v947_v49 = vld [vmem:[#allocation9 + $0x8] sm:$0xff] }
 0x108   : > { %838 = vmatprep.subr.bf16.mxu0 %v2663_v10  ;;  %v949_v50 = vld [vmem:[#allocation9 + $0x30] sm:$0xff]  ;;  %v985_v51 = vld [vmem:[#allocation9 + $0x48] sm:$0xff]  ;;  %v983_v55 = vld [vmem:[#allocation9 + $0x20] sm:$0xff] }
 0x109   : > { %2389 = vmatpush3.bf16.msra.mxu1 %v2666_v11  ;;  %v950_v57 = vld [vmem:[#allocation9 + $0x38] sm:$0xff]  ;;  %v986_v58 = vld [vmem:[#allocation9 + $0x50] sm:$0xff]  ;;  %v990_v2 = vld [vmem:[#allocation9 + $0x88] sm:$0xff] }
 0x10a   : > { %2390 = vmatprep.subr.bf16.mxu1 %v2670_v13  ;;  %v954_v1 = vld [vmem:[#allocation9 + $0x70] sm:$0xff] }
 0x10b   : > { %839 = vmatpush1.bf16.msra.mxu0 %v2665_v12  ;;  %v948_v12 = vld [vmem:[#allocation9 + $0x10] sm:$0xff] }
 0x10c   : > { %840 = vmatprep.subr.bf16.mxu0 %v2667_v14  ;;  %v675_v31 = vld [vmem:[%s3952_s20] sm:$0x7] }
 0x10d   : > { %2391 = vmatpush3.bf16.msra.mxu1 %v2670_v13  ;;  %v680_v34 = vrot.slane %v675_v31, %v679_v30  ;;  %v3597_v35 = vrot.slane %v675_v31, %v683_v32  ;;  %v688_v37 = vrot.slane %v675_v31, %v687_v33 }
 0x10e   : > { %2392 = vmatprep.subr.bf16.mxu1 %v2674_v16 }
 0x10f   : > { %841 = vmatpush1.bf16.msra.mxu0 %v2669_v15 }
 0x110   : > { %842 = vmatprep.subr.bf16.mxu0 %v2671_v17 }
 0x111   : > { %2393 = vmatpush3.bf16.msra.mxu1 %v2674_v16 }
 0x112   : > { %2394 = vmatprep.subr.bf16.mxu1 %v2678_v20 }
 0x113   : > { %843 = vmatpush1.bf16.msra.mxu0 %v2673_v18  ;;  %v957_v18 = vld [vmem:[#allocation9 + $0xa0] sm:$0xff] }
 0x114   : > { %844 = vmatprep.subr.bf16.mxu0 %v2675_v21 }
 0x115   : > { %2395 = vmatpush3.bf16.msra.mxu1 %v2678_v20 }
 0x116   : > { %2396 = vmatprep.subr.bf16.mxu1 %v2682_v23 }
 0x117   : > { %845 = vmatpush1.bf16.msra.mxu0 %v2677_v22 }
 0x118   : > { %846 = vmatprep.subr.bf16.mxu0 %v2679_v24 }
 0x119   : > { %2397 = vmatpush3.bf16.msra.mxu1 %v2682_v23  ;;  %v984_v23 = vld [vmem:[#allocation9 + $0x28] sm:$0xff] }
 0x11a   : > { %2398 = vmatprep.subr.bf16.mxu1 %v2684_v26 }
 0x11b   : > { %847 = vmatpush1.bf16.msra.mxu0 %v2681_v25 }
 0x11d   : > { %2399 = vmatpush3.bf16.msra.mxu1 %v2684_v26 }
 0x11e   : > { %865 = vmatmul.mubr.bf16.vlgmr.msra.gmra.mrb[0].mxu0 %v2683_v19  ;;  %v993_v19 = vld [vmem:[#allocation9 + $0xb8] sm:$0xff] }
 0x11f   : > { %874 = vmatprep.mubr.bf16.mxu0 %v3190_v3 }
 0x120   : > { %2401 = vmatmul.mubr.bf16.vlgmr.msra.gmra.mrb[0].mxu1 %v2685_v27 }
 0x126   : > { %875 = vmatmul.mubr.bf16.gmra.mrb[4].mxu0 %v2685_v27 }
 0x1f1   : > { %v866_v36 = vpop.f32.mrb[0].mxu0 }
 0x1f2   : > { %v867_v38 = vadd.f32 %v866_v36, %v680_v34  ;;  %v868_v39 = vpop.f32.mrb[1].mxu0 }
 0x1f3   : > { %v869_v40 = vadd.f32 %v868_v39, %v3597_v35  ;;  %v870_v41 = vpop.f32.mrb[2].mxu0  ;;  %v2402_v47 = vpop.f32.mrb[0].mxu1  ;;  %v951_v39 = vld [vmem:[#allocation9 + $0x40] sm:$0xff] }
 0x1f4   : > { %v934_v42 = vmax.f32 %v867_v38, 0.0  ;;  %v871_v45 = vadd.f32 %v870_v41, %v680_v34  ;;  %v872_v46 = vpop.f32.mrb[3].mxu0  ;;  %v928_v53 = vadd.f32 %v2402_v47, %v688_v37  ;;  %v919_v54 = vpop.f32.mrb[1].mxu1  ;;  %v952_v38 = vld [vmem:[#allocation9 + $0x60] sm:$0xff]  ;;  %v991_v47 = vld [vmem:[#allocation9 + $0xa8] sm:$0xff] }
 0x1f5   : > { %v935_v48 = vmax.f32 %v869_v40, 0.0  ;;  %v873_v52 = vadd.f32 %v872_v46, %v3597_v35  ;;  %v920_v59 = vadd.f32 %v919_v54, %v688_v37  ;;  %v2403_v60 = vpop.f32.mrb[2].mxu1  ;;  %v987_v40 = vld [vmem:[#allocation9 + $0x58] sm:$0xff] }
 0x1f6   : > { %v937_v56 = vmax.f32 %v871_v45, 0.0  ;;  %v958_v61 = vmul.f32 %v946_v43, %v934_v42  ;;  %v994_v62 = vmul.f32 %v982_v44, %v934_v42  ;;  %v942_v0 = vmax.f32 %v928_v53, 0.0  ;;  %v922_v3 = vpop.f32.mrb[3].mxu1  ;;  %v988_v43 = vld [vmem:[#allocation9 + $0x78] sm:$0xff] }
 0x1f7   : > { %v938_v63 = vmax.f32 %v873_v52, 0.0  ;;  %v936_v6 = vmax.f32 %v920_v59, 0.0  ;;  %v931_v7 = vadd.f32 %v2403_v60, %v688_v37  ;;  %v959_v8 = vmul.f32 %v947_v49, %v935_v48  ;;  %v953_v49 = vld [vmem:[#allocation9 + $0x68] sm:$0xff]  ;;  %v956_v54 = vld [vmem:[#allocation9 + $0x98] sm:$0xff] }
 0x1f8   : > { %v961_v4 = vmul.f32 %v949_v50, %v937_v56  ;;  %v997_v5 = vmul.f32 %v985_v51, %v937_v56  ;;  %v995_v9 = vmul.f32 %v983_v55, %v935_v48  ;;  %v966_v16 = vmul.f32 %v954_v1, %v942_v0  ;;  %v989_v50 = vld [vmem:[#allocation9 + $0x80] sm:$0xff]  ;;  %v992_v55 = vld [vmem:[#allocation9 + $0xb0] sm:$0xff] }
 0x1f9   : > { %v962_v10 = vmul.f32 %v950_v57, %v938_v63  ;;  %v998_v11 = vmul.f32 %v986_v58, %v938_v63  ;;  %v876_v13 = vpop.f32.mrb[4].mxu0  ;;  %v1002_v17 = vmul.f32 %v990_v2, %v942_v0  ;;  %v945_v24 = vmax.f32 %v931_v7, 0.0 }
 0x1fa   : > { %v970_v14 = vpack.c.bf16 %v961_v4, %v958_v61  ;;  %v1006_v15 = vpack.c.bf16 %v997_v5, %v994_v62  ;;  %v878_v20 = vpop.f32.mrb[5].mxu0  ;;  %v877_v25 = vadd.f32 %v876_v13, %v680_v34  ;;  %v960_v27 = vmul.f32 %v948_v12, %v936_v6 }
 0x1fb   : > { %v971_v21 = vpack.c.bf16 %v962_v10, %v959_v8  ;;  %v1007_v22 = vpack.c.bf16 %v998_v11, %v995_v9  ;;  %v880_v26 = vpop.f32.mrb[6].mxu0  ;;  %v923_v28 = vadd.f32 %v922_v3, %v688_v37  ;;  %v879_v29 = vadd.f32 %v878_v20, %v3597_v35  ;;  %v955_v37 = vld [vmem:[#allocation9 + $0x90] sm:$0xff] }
 0x1fc   : > { %976 = vst [vmem:[#allocation2] sm:$0xff] %v970_v14  ;;  %1012 = vst [vmem:[#allocation2 + $0x18] sm:$0xff] %v1006_v15  ;;  %v881_v30 = vadd.f32 %v880_v26, %v680_v34  ;;  %v882_v31 = vpop.f32.mrb[7].mxu0  ;;  %v969_v32 = vmul.f32 %v957_v18, %v945_v24  ;;  %v1005_v33 = vmul.f32 %v993_v19, %v945_v24  ;;  %v940_v36 = vmax.f32 %v877_v25, 0.0 }
 0x1fd   : > { %977 = vst [vmem:[#allocation2 + $0x8] sm:$0xff] %v971_v21  ;;  %1013 = vst [vmem:[#allocation2 + $0x20] sm:$0xff] %v1007_v22  ;;  %v883_v41 = vadd.f32 %v882_v31, %v3597_v35  ;;  %v996_v42 = vmul.f32 %v984_v23, %v936_v6  ;;  %v939_v44 = vmax.f32 %v923_v28, 0.0  ;;  %v941_v45 = vmax.f32 %v879_v29, 0.0 }
 0x1fe   : > { %v943_v46 = vmax.f32 %v881_v30, 0.0  ;;  %v975_v48 = vpack.c.bf16 %v969_v32, %v966_v16  ;;  %v1011_v34 = vpack.c.bf16 %v1005_v33, %v1002_v17  ;;  %v964_v51 = vmul.f32 %v952_v38, %v940_v36 }
 0x1ff   : > { %v963_v52 = vmul.f32 %v951_v39, %v939_v44  ;;  %v999_v53 = vmul.f32 %v987_v40, %v939_v44  ;;  %v1000_v56 = vmul.f32 %v988_v43, %v940_v36  ;;  %v944_v58 = vmax.f32 %v883_v41, 0.0 }
 0x200   : > { %981 = vst [vmem:[#allocation2 + $0x40] sm:$0xff] %v975_v48  ;;  %1017 = vst [vmem:[#allocation2 + $0x58] sm:$0xff] %v1011_v34  ;;  %v967_v35 = vmul.f32 %v955_v37, %v943_v46  ;;  %v1003_v57 = vmul.f32 %v991_v47, %v943_v46  ;;  %v965_v61 = vmul.f32 %v953_v49, %v941_v45 }
 0x201   : > { %v972_v59 = vpack.c.bf16 %v963_v52, %v960_v27  ;;  %v1008_v60 = vpack.c.bf16 %v999_v53, %v996_v42  ;;  %v1001_v62 = vmul.f32 %v989_v50, %v941_v45  ;;  %v968_v1 = vmul.f32 %v956_v54, %v944_v58 }
 0x202   : > { %v973_v63 = vpack.c.bf16 %v967_v35, %v964_v51  ;;  %v1009_v0 = vpack.c.bf16 %v1003_v57, %v1000_v56  ;;  %v1004_v2 = vmul.f32 %v992_v55, %v944_v58 }
 0x203   : > { %978 = vst [vmem:[#allocation2 + $0x10] sm:$0xff] %v972_v59  ;;  %1014 = vst [vmem:[#allocation2 + $0x28] sm:$0xff] %v1008_v60  ;;  %v974_v3 = vpack.c.bf16 %v968_v1, %v965_v61 }
 0x204   : > { %979 = vst [vmem:[#allocation2 + $0x30] sm:$0xff] %v973_v63  ;;  %1015 = vst [vmem:[#allocation2 + $0x48] sm:$0xff] %v1009_v0  ;;  %v1010_v4 = vpack.c.bf16 %v1004_v2, %v1001_v62 }
 0x205   : > { %980 = vst [vmem:[#allocation2 + $0x38] sm:$0xff] %v974_v3 }
 0x206   : > { %1016 = vst [vmem:[#allocation2 + $0x50] sm:$0xff] %v1010_v4 }
 0x207 PF: > { %v2686_v5 = vld [vmem:[%s3574_s12 + $0x4] ss:$8 sps:$4 sm:$0xff]   ;;  %v2690_v7 = vld [vmem:[%s3574_s12] ss:$8 sps:$4 sm:$0xff]   ;;  %v2692_v9 = vld [vmem:[%s3574_s12 + $0x14] ss:$8 sps:$4 sm:$0xff]  }
 0x208   : > { %v2688_v6 = vld [vmem:[%s3574_s12 + $0x104] ss:$8 sps:$4 sm:$0xff]   ;;  %1614 = vmatprep.subr.bf16.mxu1 %v2686_v5  ;;  %v2691_v8 = vld [vmem:[%s3574_s12 + $0x100] ss:$8 sps:$4 sm:$0xff]   ;;  %v2694_v10 = vld [vmem:[%s3574_s12 + $0x114] ss:$8 sps:$4 sm:$0xff]  }
 0x209   : > { %1667 = vmatprep.subr.bf16.mxu0 %v2688_v6  ;;  %1615 = vmatpush1.bf16.msra.mxu1 %v2690_v7  ;;  %v2696_v11 = vld [vmem:[%s3574_s12 + $0x10] ss:$8 sps:$4 sm:$0xff]   ;;  %v2698_v13 = vld [vmem:[%s3574_s12 + $0x24] ss:$8 sps:$4 sm:$0xff]   ;;  %v2702_v15 = vld [vmem:[%s3574_s12 + $0x20] ss:$8 sps:$4 sm:$0xff]  }
 0x20a   : > { %1668 = vmatpush1.bf16.msra.mxu0 %v2691_v8  ;;  %1616 = vmatprep.subr.bf16.mxu1 %v2692_v9  ;;  %v2697_v12 = vld [vmem:[%s3574_s12 + $0x110] ss:$8 sps:$4 sm:$0xff]   ;;  %v2700_v14 = vld [vmem:[%s3574_s12 + $0x124] ss:$8 sps:$4 sm:$0xff]   ;;  %v2703_v16 = vld [vmem:[%s3574_s12 + $0x120] ss:$8 sps:$4 sm:$0xff]  }
 0x20b   : > { %1669 = vmatprep.subr.bf16.mxu0 %v2694_v10  ;;  %v2704_v17 = vld [vmem:[%s3574_s12 + $0x34] ss:$8 sps:$4 sm:$0xff]   ;;  %v2708_v19 = vld [vmem:[%s3574_s12 + $0x30] ss:$8 sps:$4 sm:$0xff]   ;;  %v2710_v21 = vld [vmem:[%s3574_s12 + $0x44] ss:$8 sps:$4 sm:$0xff]  }
 0x20c   : > { %v2706_v18 = vld [vmem:[%s3574_s12 + $0x134] ss:$8 sps:$4 sm:$0xff]   ;;  %v2709_v20 = vld [vmem:[%s3574_s12 + $0x130] ss:$8 sps:$4 sm:$0xff]   ;;  %v2712_v22 = vld [vmem:[%s3574_s12 + $0x144] ss:$8 sps:$4 sm:$0xff]  }
 0x20d   : > { %1617 = vmatpush1.bf16.msra.mxu1 %v2696_v11  ;;  %v2714_v23 = vld [vmem:[%s3574_s12 + $0x40] ss:$8 sps:$4 sm:$0xff]   ;;  %v2716_v25 = vld [vmem:[%s3574_s12 + $0x54] ss:$8 sps:$4 sm:$0xff]   ;;  %v2720_v27 = vld [vmem:[%s3574_s12 + $0x50] ss:$8 sps:$4 sm:$0xff]  }
 0x20e   : > { %1670 = vmatpush1.bf16.msra.mxu0 %v2697_v12  ;;  %1618 = vmatprep.subr.bf16.mxu1 %v2698_v13  ;;  %v2715_v24 = vld [vmem:[%s3574_s12 + $0x140] ss:$8 sps:$4 sm:$0xff]   ;;  %v2718_v26 = vld [vmem:[%s3574_s12 + $0x154] ss:$8 sps:$4 sm:$0xff]   ;;  %v2721_v28 = vld [vmem:[%s3574_s12 + $0x150] ss:$8 sps:$4 sm:$0xff]  }
 0x20f   : > { %1671 = vmatprep.subr.bf16.mxu0 %v2700_v14  ;;  %v2722_v29 = vld [vmem:[%s3574_s12 + $0x64] ss:$8 sps:$4 sm:$0xff]   ;;  %v2726_v31 = vld [vmem:[%s3574_s12 + $0x60] ss:$8 sps:$4 sm:$0xff]   ;;  %v2728_v33 = vld [vmem:[%s3574_s12 + $0x74] ss:$8 sps:$4 sm:$0xff]  }
 0x210   : > { %v2724_v30 = vld [vmem:[%s3574_s12 + $0x164] ss:$8 sps:$4 sm:$0xff]   ;;  %v2727_v32 = vld [vmem:[%s3574_s12 + $0x160] ss:$8 sps:$4 sm:$0xff]   ;;  %v2730_v36 = vld [vmem:[%s3574_s12 + $0x174] ss:$8 sps:$4 sm:$0xff]  }
 0x211   : > { %1619 = vmatpush1.bf16.msra.mxu1 %v2702_v15  ;;  %v2732_v38 = vld [vmem:[%s3574_s12 + $0x70] ss:$8 sps:$4 sm:$0xff]   ;;  %v2734_v40 = vld [vmem:[%s3574_s12 + $0x84] ss:$8 sps:$4 sm:$0xff]   ;;  %v2738_v42 = vld [vmem:[%s3574_s12 + $0x80] ss:$8 sps:$4 sm:$0xff]  }
 0x212   : > { %1672 = vmatpush1.bf16.msra.mxu0 %v2703_v16  ;;  %1620 = vmatprep.subr.bf16.mxu1 %v2704_v17  ;;  %v2733_v39 = vld [vmem:[%s3574_s12 + $0x170] ss:$8 sps:$4 sm:$0xff]   ;;  %v2736_v41 = vld [vmem:[%s3574_s12 + $0x184] ss:$8 sps:$4 sm:$0xff]   ;;  %v2739_v43 = vld [vmem:[%s3574_s12 + $0x180] ss:$8 sps:$4 sm:$0xff]  }
 0x213   : > { %1673 = vmatprep.subr.bf16.mxu0 %v2706_v18  ;;  %v2740_v44 = vld [vmem:[%s3574_s12 + $0x94] ss:$8 sps:$4 sm:$0xff]   ;;  %v2744_v46 = vld [vmem:[%s3574_s12 + $0x90] ss:$8 sps:$4 sm:$0xff]   ;;  %v2746_v47 = vld [vmem:[%s3574_s12 + $0xa4] ss:$8 sps:$4 sm:$0xff]  }
 0x214   : > { %v2742_v45 = vld [vmem:[%s3574_s12 + $0x194] ss:$8 sps:$4 sm:$0xff]   ;;  %v2745_v37 = vld [vmem:[%s3574_s12 + $0x190] ss:$8 sps:$4 sm:$0xff]   ;;  %v2748_v48 = vld [vmem:[%s3574_s12 + $0x1a4] ss:$8 sps:$4 sm:$0xff]  }
 0x215   : > { %1621 = vmatpush1.bf16.msra.mxu1 %v2708_v19  ;;  %v2750_v34 = vld [vmem:[%s3574_s12 + $0xa0] ss:$8 sps:$4 sm:$0xff]   ;;  %v2752_v50 = vld [vmem:[%s3574_s12 + $0xb4] ss:$8 sps:$4 sm:$0xff]   ;;  %v2756_v53 = vld [vmem:[%s3574_s12 + $0xb0] ss:$8 sps:$4 sm:$0xff]  }
 0x216   : > { %1674 = vmatpush1.bf16.msra.mxu0 %v2709_v20  ;;  %1622 = vmatprep.subr.bf16.mxu1 %v2710_v21  ;;  %v2751_v49 = vld [vmem:[%s3574_s12 + $0x1a0] ss:$8 sps:$4 sm:$0xff]   ;;  %v2754_v51 = vld [vmem:[%s3574_s12 + $0x1b4] ss:$8 sps:$4 sm:$0xff]   ;;  %v2757_v55 = vld [vmem:[%s3574_s12 + $0x1b0] ss:$8 sps:$4 sm:$0xff]  }
 0x217   : > { %1675 = vmatprep.subr.bf16.mxu0 %v2712_v22  ;;  %v1019_v52 = vld [vmem:[#allocation2 + $0x8] sm:$0xff]  ;;  %v1021_v54 = vld [vmem:[#allocation2 + $0x18] sm:$0xff]  ;;  %v1018_v8 = vld [vmem:[#allocation2] sm:$0xff]  ;;  %p2335_p0 = scmp.ne.s32.totalorder %s3303_s11, 1 }
 0x218   : > { %1646 = vmatprep.mubr.bf16.mxu1 %v1019_v52  ;;  %v2758_v56 = vld [vmem:[%s3574_s12 + $0xc4] ss:$8 sps:$4 sm:$0xff]   ;;  %1699 = vmatprep.mubr.bf16.mxu0 %v1021_v54  ;;  %v2762_v57 = vld [vmem:[%s3574_s12 + $0xc0] ss:$8 sps:$4 sm:$0xff]   ;;  %v2764_v59 = vld [vmem:[%s3574_s12 + $0xd4] ss:$8 sps:$4 sm:$0xff]  }
 0x219   : > { %1623 = vmatpush1.bf16.msra.mxu1 %v2714_v23  ;;  %v2760_v35 = vld [vmem:[%s3574_s12 + $0x1c4] ss:$8 sps:$4 sm:$0xff]   ;;  %v2763_v58 = vld [vmem:[%s3574_s12 + $0x1c0] ss:$8 sps:$4 sm:$0xff]   ;;  %v2766_v60 = vld [vmem:[%s3574_s12 + $0x1d4] ss:$8 sps:$4 sm:$0xff]  }
 0x21a   : > { %1676 = vmatpush1.bf16.msra.mxu0 %v2715_v24  ;;  %1624 = vmatprep.subr.bf16.mxu1 %v2716_v25  ;;  %v2768_v61 = vld [vmem:[%s3574_s12 + $0xd0] ss:$8 sps:$4 sm:$0xff]   ;;  %v2770_v63 = vld [vmem:[%s3574_s12 + $0xe4] ss:$8 sps:$4 sm:$0xff]   ;;  %v2774_v1 = vld [vmem:[%s3574_s12 + $0xe0] ss:$8 sps:$4 sm:$0xff]  }
 0x21b   : > { %1677 = vmatprep.subr.bf16.mxu0 %v2718_v26  ;;  %v2769_v62 = vld [vmem:[%s3574_s12 + $0x1d0] ss:$8 sps:$4 sm:$0xff]   ;;  %v2772_v0 = vld [vmem:[%s3574_s12 + $0x1e4] ss:$8 sps:$4 sm:$0xff]   ;;  %v2775_v2 = vld [vmem:[%s3574_s12 + $0x1e0] ss:$8 sps:$4 sm:$0xff]  }
 0x21c   : > { %v2776_v3 = vld [vmem:[%s3574_s12 + $0xf4] ss:$8 sps:$4 sm:$0xff]   ;;  %v2780_v5 = vld [vmem:[%s3574_s12 + $0xf0] ss:$8 sps:$4 sm:$0xff]   ;;  %v2784_v7 = vld [vmem:[%s3574_s12 + $0x204] ss:$8 sps:$4 sm:$0xff]  }
 0x21d   : > { %1625 = vmatpush1.bf16.msra.mxu1 %v2720_v27  ;;  %v2778_v4 = vld [vmem:[%s3574_s12 + $0x1f4] ss:$8 sps:$4 sm:$0xff]   ;;  %v2781_v6 = vld [vmem:[%s3574_s12 + $0x1f0] ss:$8 sps:$4 sm:$0xff]   ;;  %v2782_v9 = vld [vmem:[%s3574_s12 + $0x200] ss:$8 sps:$4 sm:$0xff]  }
 0x21e   : > { %1678 = vmatpush1.bf16.msra.mxu0 %v2721_v28  ;;  %1626 = vmatprep.subr.bf16.mxu1 %v2722_v29  ;;  %v1020_v10 = vld [vmem:[#allocation2 + $0x10] sm:$0xff]  ;;  %v1025_v12 = vld [vmem:[#allocation2 + $0x38] sm:$0xff]  ;;  %v1027_v13 = vld [vmem:[#allocation2 + $0x48] sm:$0xff]  ;;  %vm3192_vm0 = vmmov (!%p2335_p0), 0   ;;  %s3953_s7 = sld [smem:[#allocation38_spill]] (!%p2335_p0)  ;;  %vm1850_vm1 = vcmask (!%p2335_p0), 1041409  }
 0x21f   : > { %1679 = vmatprep.subr.bf16.mxu0 %v2724_v30  ;;  %v2787_v11 = vld [vmem:[%s3574_s12 + $0x214] ss:$8 sps:$4 sm:$0xff]   ;;  %v2785_v14 = vld [vmem:[%s3574_s12 + $0x210] ss:$8 sps:$4 sm:$0xff]   ;;  %v2790_v15 = vld [vmem:[%s3574_s12 + $0x224] ss:$8 sps:$4 sm:$0xff]  }
 0x220   : > { %v2788_v16 = vld [vmem:[%s3574_s12 + $0x220] ss:$8 sps:$4 sm:$0xff]   ;;  %v1026_v18 = vld [vmem:[#allocation2 + $0x40] sm:$0xff]  ;;  %v1023_v20 = vld [vmem:[#allocation2 + $0x28] sm:$0xff]  ;;  %s3954_s1 = sld [smem:[#allocation39_spill]] (!%p2335_p0)  ;;  %vm1933_vm2 = vcmask (!%p2335_p0), 1041408  }
 0x221   : > { %1627 = vmatpush1.bf16.msra.mxu1 %v2726_v31  ;;  %v1024_v17 = vld [vmem:[#allocation2 + $0x30] sm:$0xff]  ;;  %v1029_v21 = vld [vmem:[#allocation2 + $0x58] sm:$0xff]  ;;  %v2791_v22 = vld [vmem:[%s3574_s12 + $0x230] ss:$8 sps:$4 sm:$0xff]   ;;  %vm1945_vm3 = vcmask (!%p2335_p0), 1024   ;;  %s3956_s4 = sld [smem:[#allocation43_spill]] (!%p2335_p0) }
 0x222   : > { %1680 = vmatpush1.bf16.msra.mxu0 %v2727_v32  ;;  %1628 = vmatprep.subr.bf16.mxu1 %v2728_v33  ;;  %v2793_v19 = vld [vmem:[%s3574_s12 + $0x234] ss:$8 sps:$4 sm:$0xff]   ;;  %v2796_v23 = vld [vmem:[%s3574_s12 + $0x244] ss:$8 sps:$4 sm:$0xff]   ;;  %v2794_v24 = vld [vmem:[%s3574_s12 + $0x240] ss:$8 sps:$4 sm:$0xff]  }
 0x223   : > { %1681 = vmatprep.subr.bf16.mxu0 %v2730_v36  ;;  %v2799_v25 = vld [vmem:[%s3574_s12 + $0x254] ss:$8 sps:$4 sm:$0xff]   ;;  %v2797_v26 = vld [vmem:[%s3574_s12 + $0x250] ss:$8 sps:$4 sm:$0xff]   ;;  %v2802_v27 = vld [vmem:[%s3574_s12 + $0x264] ss:$8 sps:$4 sm:$0xff]  }
 0x224   : > { %v2800_v28 = vld [vmem:[%s3574_s12 + $0x260] ss:$8 sps:$4 sm:$0xff]   ;;  %v2805_v29 = vld [vmem:[%s3574_s12 + $0x274] ss:$8 sps:$4 sm:$0xff]   ;;  %v2803_v30 = vld [vmem:[%s3574_s12 + $0x270] ss:$8 sps:$4 sm:$0xff]  }
 0x225   : > { %1629 = vmatpush1.bf16.msra.mxu1 %v2732_v38  ;;  %v2808_v31 = vld [vmem:[%s3574_s12 + $0x284] ss:$8 sps:$4 sm:$0xff]   ;;  %v2806_v32 = vld [vmem:[%s3574_s12 + $0x280] ss:$8 sps:$4 sm:$0xff]   ;;  %v2811_v33 = vld [vmem:[%s3574_s12 + $0x294] ss:$8 sps:$4 sm:$0xff]  }
 0x226   : > { %1682 = vmatpush1.bf16.msra.mxu0 %v2733_v39  ;;  %1630 = vmatprep.subr.bf16.mxu1 %v2734_v40  ;;  %v2809_v36 = vld [vmem:[%s3574_s12 + $0x290] ss:$8 sps:$4 sm:$0xff]   ;;  %v2814_v38 = vld [vmem:[%s3574_s12 + $0x2a4] ss:$8 sps:$4 sm:$0xff]   ;;  %v2812_v39 = vld [vmem:[%s3574_s12 + $0x2a0] ss:$8 sps:$4 sm:$0xff]  }
 0x227   : > { %1683 = vmatprep.subr.bf16.mxu0 %v2736_v41  ;;  %v2817_v40 = vld [vmem:[%s3574_s12 + $0x2b4] ss:$8 sps:$4 sm:$0xff]   ;;  %v2815_v41 = vld [vmem:[%s3574_s12 + $0x2b0] ss:$8 sps:$4 sm:$0xff]   ;;  %v1130_v54 = vld [vmem:[%s3581_s18 + $0x20] sm:$0xff] }
 0x229   : > { %1631 = vmatpush1.bf16.msra.mxu1 %v2738_v42  ;;  %v2820_v42 = vld [vmem:[%s3574_s12 + $0x2c4] ss:$8 sps:$4 sm:$0xff]  }
 0x22a   : > { %1684 = vmatpush1.bf16.msra.mxu0 %v2739_v43  ;;  %1632 = vmatprep.subr.bf16.mxu1 %v2740_v44  ;;  %v2818_v43 = vld [vmem:[%s3574_s12 + $0x2c0] ss:$8 sps:$4 sm:$0xff]   ;;  %v2823_v44 = vld [vmem:[%s3574_s12 + $0x2d4] ss:$8 sps:$4 sm:$0xff]  }
 0x22b   : > { %1685 = vmatprep.subr.bf16.mxu0 %v2742_v45  ;;  %v2821_v45 = vld [vmem:[%s3574_s12 + $0x2d0] ss:$8 sps:$4 sm:$0xff]  }
 0x22d   : > { %1633 = vmatpush1.bf16.msra.mxu1 %v2744_v46  ;;  %v2826_v46 = vld [vmem:[%s3574_s12 + $0x2e4] ss:$8 sps:$4 sm:$0xff]  }
 0x22e   : > { %1686 = vmatpush1.bf16.msra.mxu0 %v2745_v37  ;;  %1634 = vmatprep.subr.bf16.mxu1 %v2746_v47  ;;  %v2824_v37 = vld [vmem:[%s3574_s12 + $0x2e0] ss:$8 sps:$4 sm:$0xff]   ;;  %v2829_v47 = vld [vmem:[%s3574_s12 + $0x2f4] ss:$8 sps:$4 sm:$0xff]  }
 0x22f   : > { %1687 = vmatprep.subr.bf16.mxu0 %v2748_v48  ;;  %v2827_v48 = vld [vmem:[%s3574_s12 + $0x2f0] ss:$8 sps:$4 sm:$0xff]   ;;  %s3955_s12 = sld [smem:[#allocation40_spill]] (!%p2335_p0) }
 0x231   : > { %1635 = vmatpush1.bf16.msra.mxu1 %v2750_v34  ;;  %v1022_v34 = vld [vmem:[#allocation2 + $0x20] sm:$0xff] }
 0x232   : > { %1688 = vmatpush1.bf16.msra.mxu0 %v2751_v49  ;;  %1636 = vmatprep.subr.bf16.mxu1 %v2752_v50  ;;  %v1028_v49 = vld [vmem:[#allocation2 + $0x50] sm:$0xff] }
 0x233   : > { %1689 = vmatprep.subr.bf16.mxu0 %v2754_v51 }
 0x235   : > { %1637 = vmatpush1.bf16.msra.mxu1 %v2756_v53 }
 0x236   : > { %1690 = vmatpush1.bf16.msra.mxu0 %v2757_v55  ;;  %1638 = vmatprep.subr.bf16.mxu1 %v2758_v56  ;;  %v1131_v55 = vld [vmem:[%s3581_s18 + $0x28] sm:$0xff] }
 0x237   : > { %1691 = vmatprep.subr.bf16.mxu0 %v2760_v35  ;;  %v1132_v35 = vld [vmem:[%s3581_s18 + $0x30] sm:$0xff] }
 0x239   : > { %1639 = vmatpush1.bf16.msra.mxu1 %v2762_v57 }
 0x23a   : > { %1692 = vmatpush1.bf16.msra.mxu0 %v2763_v58  ;;  %1640 = vmatprep.subr.bf16.mxu1 %v2764_v59 }
 0x23b   : > { %1693 = vmatprep.subr.bf16.mxu0 %v2766_v60  ;;  %v1133_v60 = vld [vmem:[%s3581_s18 + $0x38] sm:$0xff] }
 0x23d   : > { %1641 = vmatpush1.bf16.msra.mxu1 %v2768_v61 }
 0x23e   : > { %1694 = vmatpush1.bf16.msra.mxu0 %v2769_v62  ;;  %1642 = vmatprep.subr.bf16.mxu1 %v2770_v63 }
 0x23f   : > { %1695 = vmatprep.subr.bf16.mxu0 %v2772_v0 }
 0x241   : > { %1643 = vmatpush1.bf16.msra.mxu1 %v2774_v1 }
 0x242   : > { %1696 = vmatpush1.bf16.msra.mxu0 %v2775_v2  ;;  %1644 = vmatprep.subr.bf16.mxu1 %v2776_v3 }
 0x243   : > { %1697 = vmatprep.subr.bf16.mxu0 %v2778_v4 }
 0x245   : > { %1645 = vmatpush1.bf16.msra.mxu1 %v2780_v5 }
 0x246   : > { %1698 = vmatpush1.bf16.msra.mxu0 %v2781_v6  ;;  %2463 = vmatprep.subr.bf16.mxu1 %v2784_v7 }
 0x247   : > { %1720 = vmatprep.subr.bf16.mxu0 %v2784_v7 }
 0x248   : > { %1647 = vmatmul.mubr.bf16.vlgmr.msra.gmra.mrb[0].mxu1 %v1018_v8 }
 0x249   : > { %1700 = vmatmul.mubr.bf16.vlgmr.msra.gmra.mrb[0].mxu0 %v1020_v10  ;;  %2479 = vmatpush1.bf16.msra.mxu1 %v2782_v9  ;;  %v1127_v10 = vld [vmem:[%s3581_s18 + $0x8] sm:$0xff] }
 0x24a   : > { %1721 = vmatpush1.bf16.msra.mxu0 %v2782_v9  ;;  %2464 = vmatprep.subr.bf16.mxu1 %v2787_v11  ;;  %v1126_v9 = vld [vmem:[%s3581_s18] sm:$0xff] }
 0x24b   : > { %1722 = vmatprep.subr.bf16.mxu0 %v2787_v11  ;;  %1656 = vmatprep.mubr.bf16.mxu1 %v1025_v12  ;;  %v1128_v11 = vld [vmem:[%s3581_s18 + $0x10] sm:$0xff] }
 0x24c   : > { %1709 = vmatprep.mubr.bf16.mxu0 %v1027_v13  ;;  %v1129_v13 = vld [vmem:[%s3581_s18 + $0x18] sm:$0xff] }
 0x24d   : > { %2480 = vmatpush1.bf16.msra.mxu1 %v2785_v14 }
 0x24e   : > { %1723 = vmatpush1.bf16.msra.mxu0 %v2785_v14  ;;  %2465 = vmatprep.subr.bf16.mxu1 %v2790_v15 }
 0x24f   : > { %1724 = vmatprep.subr.bf16.mxu0 %v2790_v15 }
 0x250   : > { %1657 = vmatmul.mubr.bf16.gmra.mrb[4].mxu1 %v1024_v17 }
 0x251   : > { %1710 = vmatmul.mubr.bf16.gmra.mrb[4].mxu0 %v1026_v18  ;;  %2481 = vmatpush1.bf16.msra.mxu1 %v2788_v16 }
 0x252   : > { %1725 = vmatpush1.bf16.msra.mxu0 %v2788_v16  ;;  %2466 = vmatprep.subr.bf16.mxu1 %v2793_v19 }
 0x253   : > { %1726 = vmatprep.subr.bf16.mxu0 %v2793_v19  ;;  %1752 = vmatprep.mubr.bf16.mxu0 %v1023_v20 }
 0x254   : > { %1762 = vmatprep.mubr.bf16.mxu1 %v1029_v21 }
 0x255   : > { %2482 = vmatpush1.bf16.msra.mxu1 %v2791_v22 }
 0x256   : > { %1727 = vmatpush1.bf16.msra.mxu0 %v2791_v22  ;;  %2467 = vmatprep.subr.bf16.mxu1 %v2796_v23 }
 0x257   : > { %1728 = vmatprep.subr.bf16.mxu0 %v2796_v23 }
 0x259   : > { %2483 = vmatpush1.bf16.msra.mxu1 %v2794_v24 }
 0x25a   : > { %1729 = vmatpush1.bf16.msra.mxu0 %v2794_v24  ;;  %2468 = vmatprep.subr.bf16.mxu1 %v2799_v25 }
 0x25b   : > { %1730 = vmatprep.subr.bf16.mxu0 %v2799_v25 }
 0x25d   : > { %2484 = vmatpush1.bf16.msra.mxu1 %v2797_v26 }
 0x25e   : > { %1731 = vmatpush1.bf16.msra.mxu0 %v2797_v26  ;;  %2469 = vmatprep.subr.bf16.mxu1 %v2802_v27 }
 0x25f   : > { %1732 = vmatprep.subr.bf16.mxu0 %v2802_v27 }
 0x261   : > { %2485 = vmatpush1.bf16.msra.mxu1 %v2800_v28 }
 0x262   : > { %1733 = vmatpush1.bf16.msra.mxu0 %v2800_v28  ;;  %2470 = vmatprep.subr.bf16.mxu1 %v2805_v29 }
 0x263   : > { %1734 = vmatprep.subr.bf16.mxu0 %v2805_v29 }
 0x265   : > { %2486 = vmatpush1.bf16.msra.mxu1 %v2803_v30 }
 0x266   : > { %1735 = vmatpush1.bf16.msra.mxu0 %v2803_v30  ;;  %2471 = vmatprep.subr.bf16.mxu1 %v2808_v31 }
 0x267   : > { %1736 = vmatprep.subr.bf16.mxu0 %v2808_v31 }
 0x269   : > { %2487 = vmatpush1.bf16.msra.mxu1 %v2806_v32 }
 0x26a   : > { %1737 = vmatpush1.bf16.msra.mxu0 %v2806_v32  ;;  %2472 = vmatprep.subr.bf16.mxu1 %v2811_v33 }
 0x26b   : > { %1738 = vmatprep.subr.bf16.mxu0 %v2811_v33  ;;  %v1825_v33 = vld [vmem:[#allocation15] sm:$0xff] (!%p2335_p0) }
 0x26d   : > { %2488 = vmatpush1.bf16.msra.mxu1 %v2809_v36 }
 0x26e   : > { %1739 = vmatpush1.bf16.msra.mxu0 %v2809_v36  ;;  %2473 = vmatprep.subr.bf16.mxu1 %v2814_v38  ;;  %v1826_v36 = vld [vmem:[#allocation15 + $0x8] sm:$0xff] (!%p2335_p0) }
 0x26f   : > { %1740 = vmatprep.subr.bf16.mxu0 %v2814_v38  ;;  %v1827_v38 = vld [vmem:[#allocation15 + $0x10] sm:$0xff] (!%p2335_p0) }
 0x271   : > { %2489 = vmatpush1.bf16.msra.mxu1 %v2812_v39 }
 0x272   : > { %1741 = vmatpush1.bf16.msra.mxu0 %v2812_v39  ;;  %2474 = vmatprep.subr.bf16.mxu1 %v2817_v40  ;;  %v3191_v39 = vmov (!%p2335_p0), 0.0|0.0  }
 0x273   : > { %1742 = vmatprep.subr.bf16.mxu0 %v2817_v40  ;;  %v2440_v40 = vpack.c.bf16 (!%p2335_p0), %v1826_v36, %v1825_v33  ;;  %v2336_v36 = vld [vmem:[%s3954_s1] ss:$0 sm:$0xff] (!%p2335_p0) }
 0x275   : > { %2490 = vmatpush1.bf16.msra.mxu1 %v2815_v41 }
 0x276   : > { %1743 = vmatpush1.bf16.msra.mxu0 %v2815_v41  ;;  %2475 = vmatprep.subr.bf16.mxu1 %v2820_v42  ;;  %v1828_v41 = vld [vmem:[#allocation15 + $0x18] sm:$0xff] (!%p2335_p0) }
 0x277   : > { %1744 = vmatprep.subr.bf16.mxu0 %v2820_v42  ;;  %v3193_v42 = vmov (!%p2335_p0), 0.0  }
 0x279   : > { %2491 = vmatpush1.bf16.msra.mxu1 %v2818_v43 }
 0x27a   : > { %1745 = vmatpush1.bf16.msra.mxu0 %v2818_v43  ;;  %2476 = vmatprep.subr.bf16.mxu1 %v2823_v44  ;;  %v2443_v43 = vpack.c.bf16 (!%p2335_p0), %v1828_v41, %v1827_v38 }
 0x27b   : > { %1746 = vmatprep.subr.bf16.mxu0 %v2823_v44  ;;  %v1829_v44 = vld [vmem:[#allocation15 + $0x20] sm:$0xff] (!%p2335_p0) }
 0x27d   : > { %2492 = vmatpush1.bf16.msra.mxu1 %v2821_v45 }
 0x27e   : > { %1747 = vmatpush1.bf16.msra.mxu0 %v2821_v45  ;;  %2477 = vmatprep.subr.bf16.mxu1 %v2826_v46  ;;  %v1830_v45 = vld [vmem:[#allocation15 + $0x28] sm:$0xff] (!%p2335_p0) }
 0x27f   : > { %1748 = vmatprep.subr.bf16.mxu0 %v2826_v46  ;;  %v1787_v46 = vld [vmem:[#allocation13] sm:$0xff] (!%p2335_p0) }
 0x281   : > { %2493 = vmatpush1.bf16.msra.mxu1 %v2824_v37 }
 0x282   : > { %1749 = vmatpush1.bf16.msra.mxu0 %v2824_v37  ;;  %2478 = vmatprep.subr.bf16.mxu1 %v2829_v47  ;;  %v1788_v37 = vld [vmem:[#allocation13 + $0x8] sm:$0xff] (!%p2335_p0) }
 0x283   : > { %1750 = vmatprep.subr.bf16.mxu0 %v2829_v47  ;;  %v1789_v47 = vrot.slane (!%p2335_p0), %v1787_v46, 4 }
 0x285   : > { %2494 = vmatpush1.bf16.msra.mxu1 %v2827_v48 }
 0x286   : > { %1751 = vmatpush1.bf16.msra.mxu0 %v2827_v48  ;;  %v1795_v48 = vrot.slane (!%p2335_p0), %v1788_v37, 4 }
 0x287   : > { %2439 = vmatprep.subr.bf16.mxu0 (!%p2335_p0), %v3191_v39 }
 0x288   : > { %1763 = vmatmul.mubr.bf16.vlgmr.msra.gmra.mrb[8].mxu1 %v1028_v49  ;;  %v1804_v49 = vld [vmem:[%s3953_s7 + $0x8] sm:$0xff] (!%p2335_p0) }
 0x289   : > { %1753 = vmatmul.mubr.bf16.vlgmr.msra.gmra.mrb[0].mxu0 %v1022_v34  ;;  %v1803_v34 = vld [vmem:[%s3953_s7] sm:$0xff] (!%p2335_p0) }
 0x28a   : > { %2436 = vmatprep.mubr.msk.f32.mxu0 (!%p2335_p0), %vm3192_vm0, %v3193_v42  ;;  %2441 = vmatpush3.bf16.msra.mxu0 (!%p2335_p0), %v2440_v40  ;;  %v2337_v42 = vld [vmem:[%s3955_s12] ss:$0 sm:$0xff] (!%p2335_p0) }
 0x28b   : > { %2442 = vmatprep.subr.bf16.mxu0 (!%p2335_p0), %v3191_v39 }
 0x28e   : > { %2444 = vmatpush3.bf16.msra.mxu0 (!%p2335_p0), %v2443_v43 }
 0x28f   : > { %2445 = vmatprep.subr.bf16.mxu0 (!%p2335_p0), %v3191_v39 }
 0x31b   : > { %v1648_v50 = vpop.f32.mrb[0].mxu1 }
 0x31c   : > { %v1650_v51 = vpop.f32.mrb[1].mxu1  ;;  %v1649_v12 = vadd.f32 %v1648_v50, %v1126_v9  ;;  %v1805_v50 = vld [vmem:[%s3953_s7 + $0x10] sm:$0xff] (!%p2335_p0) }
 0x31d   : > { %v1652_v52 = vpop.f32.mrb[2].mxu1  ;;  %v1651_v14 = vadd.f32 %v1650_v51, %v1127_v10  ;;  %v2446_v51 = vpack.c.bf16 (!%p2335_p0), %v1830_v45, %v1829_v44  ;;  %v2338_v45 = vld [vmem:[#allocation3] ss:$0 sm:$0xff] (!%p2335_p0) }
 0x31e   : > { %v1654_v53 = vpop.f32.mrb[3].mxu1  ;;  %v1653_v17 = vadd.f32 %v1652_v52, %v1128_v11  ;;  %v1806_v52 = vld [vmem:[%s3953_s7 + $0x18] sm:$0xff] (!%p2335_p0) }
 0x31f   : > { %v1655_v22 = vadd.f32 %v1654_v53, %v1129_v13  ;;  %v1807_v53 = vadd.f32 (!%p2335_p0), %v1804_v49, %v1803_v34  ;;  %2447 = vmatpush3.bf16.msra.mxu0 (!%p2335_p0), %v2446_v51  ;;  %v1835_v11 = vld [vmem:[#allocation15 + $0x50] sm:$0xff] (!%p2335_p0) }
 0x320   : > { %2448 = vmatprep.subr.bf16.mxu0 (!%p2335_p0), %v3191_v39 }
 0x323   : > { %v1658_v56 = vpop.f32.mrb[4].mxu1 }
 0x324   : > { %v1711_v57 = vpop.f32.mrb[4].mxu0  ;;  %v1659_v58 = vadd.f32 %v1658_v56, %v1130_v54  ;;  %v1660_v59 = vpop.f32.mrb[5].mxu1  ;;  %v1831_v54 = vld [vmem:[#allocation15 + $0x30] sm:$0xff] (!%p2335_p0)  ;;  %v1790_v56 = vadd.f32 (!%p2335_p0), %v1789_v47, %v1787_v46 }
 0x325   : > { %v1713_v61 = vpop.f32.mrb[5].mxu0  ;;  %v1661_v62 = vadd.f32 %v1660_v59, %v1131_v55  ;;  %v1662_v63 = vpop.f32.mrb[6].mxu1  ;;  %v1832_v55 = vld [vmem:[#allocation15 + $0x38] sm:$0xff] (!%p2335_p0) }
 0x326   : > { %v1715_v0 = vpop.f32.mrb[6].mxu0  ;;  %v1663_v1 = vadd.f32 %v1662_v63, %v1132_v35  ;;  %v1712_v2 = vadd.f32 %v1711_v57, %v1659_v58  ;;  %v1664_v3 = vpop.f32.mrb[7].mxu1  ;;  %v1796_v35 = vadd.f32 (!%p2335_p0), %v1795_v48, %v1788_v37  ;;  %v1814_v57 = vadd.f32 (!%p2335_p0), %v1806_v52, %v1805_v50 }
 0x327   : > { %v1717_v4 = vpop.f32.mrb[7].mxu0  ;;  %v1665_v5 = vadd.f32 %v1664_v3, %v1133_v60  ;;  %v1714_v6 = vadd.f32 %v1713_v61, %v1661_v62  ;;  %v1808_v58 = vrot.slane (!%p2335_p0), %v1807_v53, 4  ;;  %v1791_v59 = vrot.slane (!%p2335_p0), %v1790_v56, 2 }
 0x328   : > { %v1716_v7 = vadd.f32 %v1715_v0, %v1663_v1  ;;  %v1797_v60 = vrot.slane (!%p2335_p0), %v1796_v35, 2  ;;  %v1815_v61 = vrot.slane (!%p2335_p0), %v1814_v57, 4  ;;  %v2449_v62 = vpack.c.bf16 (!%p2335_p0), %v1832_v55, %v1831_v54  ;;  %v1833_v0 = vld [vmem:[#allocation15 + $0x40] sm:$0xff] (!%p2335_p0)  ;;  %v1834_v1 = vld [vmem:[#allocation15 + $0x48] sm:$0xff] (!%p2335_p0) }
 0x329   : > { %v1718_v8 = vadd.f32 %v1717_v4, %v1665_v5  ;;  %v1809_v63 = vadd.f32 (!%p2335_p0), %v1808_v58, %v1807_v53 }
 0x32a   : > { %v1798_v3 = vadd.f32 (!%p2335_p0), %v1797_v60, %v1796_v35  ;;  %v1816_v4 = vadd.f32 (!%p2335_p0), %v1815_v61, %v1814_v57  ;;  %2450 = vmatpush3.bf16.msra.mxu0 (!%p2335_p0), %v2449_v62 }
 0x32b   : > { %v1810_v5 = vrot.slane (!%p2335_p0), %v1809_v63, 2  ;;  %2451 = vmatprep.subr.bf16.mxu0 (!%p2335_p0), %v3191_v39 }
 0x32c   : > { %v1799_v9 = vrot.slane (!%p2335_p0), %v1798_v3, 1 }
 0x32d   : > { %v1811_v10 = vadd.f32 (!%p2335_p0), %v1810_v5, %v1809_v63 }
 0x35b   : > { %v1764_v16 = vpop.f32.mrb[8].mxu1 }
 0x35c   : > { %v1754_v15 = vpop.f32.mrb[0].mxu0  ;;  %v1765_v19 = vadd.f32 %v1764_v16, %v1712_v2  ;;  %v1766_v21 = vpop.f32.mrb[9].mxu1  ;;  %1786 = sbr.rel (%p2335_p0) target bundleno = 1243 (0x4db), region = 104  ;;  %v1792_v2 = vadd.f32 (!%p2335_p0), %v1791_v59, %v1790_v56 }
 0x35d   : > { %v2496_v18 = vadd.f32 %v1754_v15, %v1649_v12  ;;  %v1756_v20 = vpop.f32.mrb[1].mxu0  ;;  %v1767_v24 = vadd.f32 %v1766_v21, %v1714_v6  ;;  %v1768_v26 = vpop.f32.mrb[10].mxu1  ;;  %v1817_v6 = vrot.slane (!%p2335_p0), %v1816_v4, 2  ;;  %v1836_v12 = vld [vmem:[#allocation15 + $0x58] sm:$0xff] (!%p2335_p0) }
 0x35e   : > { %v2498_v23 = vadd.f32 %v1756_v20, %v1651_v14  ;;  %v1758_v25 = vpop.f32.mrb[2].mxu0  ;;  %1775 = vst [vmem:[%s3590_s0] sm:$0xff] %v1765_v19  ;;  %v1769_v28 = vadd.f32 %v1768_v26, %v1716_v7  ;;  %v1770_v30 = vpop.f32.mrb[11].mxu1  ;;  %v2452_v7 = vpack.c.bf16 (!%p2335_p0), %v1834_v1, %v1833_v0  ;;  %v1812_v14 = vrot.slane (!%p2335_p0), %v1811_v10, 1 }
 0x35f   : > { %1773 = vst [vmem:[%s3588_s19] sm:$0xff] %v2496_v18  ;;  %v2500_v27 = vadd.f32 %v1758_v25, %v1653_v17  ;;  %v1760_v29 = vpop.f32.mrb[3].mxu0  ;;  %2333 = vst [vmem:[%s3590_s0 + $0x10] sm:$0xff] %v1767_v24  ;;  %v1771_v32 = vadd.f32 %v1770_v30, %v1718_v8  ;;  %v1793_v8 = vrot.slane (!%p2335_p0), %v1792_v2, 1  ;;  %v1818_v13 = vadd.f32 (!%p2335_p0), %v1817_v6, %v1816_v4  ;;  %v1837_v17 = vld [vmem:[#allocation15 + $0x60] sm:$0xff] (!%p2335_p0)  ;;  %v1838_v18 = vld [vmem:[#allocation15 + $0x68] sm:$0xff] (!%p2335_p0) }
 0x360   : > { %2331 = vst [vmem:[%s3588_s19 + $0x10] sm:$0xff] %v2498_v23  ;;  %v2502_v31 = vadd.f32 %v1760_v29, %v1655_v22  ;;  %1776 = vst [vmem:[%s3590_s0 + $0x8] sm:$0xff] %v1769_v28  ;;  %2453 = vmatpush3.bf16.msra.mxu0 (!%p2335_p0), %v2452_v7  ;;  %v2455_v16 = vpack.c.bf16 (!%p2335_p0), %v1836_v12, %v1835_v11  ;;  %v1800_v20 = vadd.f32 (!%p2335_p0), %v1799_v9, %v1798_v3  ;;  %v1839_v28 = vld [vmem:[#allocation15 + $0x70] sm:$0xff] (!%p2335_p0)  ;;  %v1840_v29 = vld [vmem:[#allocation15 + $0x78] sm:$0xff] (!%p2335_p0) }
 0x361   : > { %1774 = vst [vmem:[%s3588_s19 + $0x8] sm:$0xff] %v2500_v27  ;;  %2334 = vst [vmem:[%s3590_s0 + $0x18] sm:$0xff] %v1771_v32  ;;  %v1819_v15 = vrot.slane (!%p2335_p0), %v1818_v13, 1  ;;  %v1794_v19 = vadd.f32 (!%p2335_p0), %v1793_v8, %v1792_v2  ;;  %v1813_v21 = vadd.f32 (!%p2335_p0), %v1812_v14, %v1811_v10  ;;  %2454 = vmatprep.subr.bf16.mxu0 (!%p2335_p0), %v3191_v39 }
 0x362   : > { %2332 = vst [vmem:[%s3588_s19 + $0x18] sm:$0xff] %v2502_v31  ;;  %v2458_v23 = vpack.c.bf16 (!%p2335_p0), %v1838_v18, %v1837_v17  ;;  %v1802_v25 = vmul.f32 (!%p2335_p0), 0.125, %v1800_v20  ;;  %v2461_v30 = vpack.c.bf16 (!%p2335_p0), %v1840_v29, %v1839_v28 }
 0x363   : > { %v1820_v22 = vadd.f32 %v1819_v15, %v1818_v13  ;;  %v1801_v24 = vmul.f32 0.125, %v1794_v19  ;;  %v1821_v26 = vmul.f32 0.0625, %v1813_v21 }
 0x364   : > { %2456 = vmatpush3.bf16.msra.mxu0 %v2455_v16 }
 0x365   : > { %v1822_v27 = vmul.f32 0.0625, %v1820_v22  ;;  %2457 = vmatprep.subr.bf16.mxu0 %v3191_v39  ;;  %v1823_v31 = vmax.f32 %v1801_v24, %v1821_v26 }
 0x367   : > { %v1824_v32 = vmax.f32 %v1802_v25, %v1822_v27 }
 0x368   : > { %2459 = vmatpush3.bf16.msra.mxu0 %v2458_v23 }
 0x369   : > { %2460 = vmatprep.subr.bf16.mxu0 %v3191_v39  ;;  %v1851_v33 = vsel %vm1850_vm1, %v1824_v32, %v1823_v31 }
 0x36c   : > { %2462 = vmatpush3.bf16.msra.mxu0 %v2461_v30 }
 0x36f   : > { %2437 = vmatmul.mubr.f32.vlgmr.msra.gmra.mrb[0].mxu0 %v1851_v33 }
 0x442   : > { %v1919_v38 = vpop.f32.mrb[0].mxu0 }
 0x443   : > { %v1920_v40 = vadd.f32 %v2336_v36, %v1919_v38  ;;  %v2438_v41 = vpop.f32.mrb[1].mxu0 }
 0x445   : > { %v1923_v43 = vadd.f32 %v1920_v40, %v1851_v33 }
 0x447   : > { %1924 = vst [vmem:[#allocation19] sm:$0x3] %v1923_v43  ;;  %v1932_v44 = vmul.f32 %v2337_v42, %v1923_v43 }
 0x449   : > { %v1934_v39 = vsel %vm1933_vm2, %v1932_v44, 0.0 }
 0x44a   : > { %1935 = vadd.xlane.f32.xlu0 %v1934_v39 }
 0x4d7   : > { %v1936_v46 = vpop.xlane.xlu0 %1935 }
 0x4d8   : > { %v1944_v37 = vadd.f32 %v2338_v45, %v1936_v46 }
 0x4da   : > { %1946 = vst.msk [vmem:[%s3956_s4] sm:$0x3] %vm1945_vm3, %v1944_v37 }
 0x4db PF: > { %s3957_s25 = sld [smem:[#allocation32_spill]]  ;;  %s2354_s2 = sshll.u32 %s3303_s11, 9 }
 0x4dc   : > { %s3958_s30 = sld [smem:[#allocation42_spill]]  ;;  %s1984_s22 = sshll.u32 %s3590_s0, 4  ;;  %s3754_s22 = int_to_ptr.vmem [resolvable:$true] %s1984_s22 }
 0x4dd   : > { %s3758_s29 = scalar_lea.sflag [#allocation18], %s552_s6  ;;  %s3030_s17 = scalar_lea.vmem %s3754_s22, 512 }
 0x4de   : > { %p3031_p1 = scmp.ne.s32.totalorder %s3754_s22, %s3030_s17  ;;  %s3194_s28 = smov [#allocation17]  }
 0x4df   : > { %s3034_s15 = sshll.u32 %s3194_s28, 4  ;;  %s3035_s15 = int_to_ptr.vmem [resolvable:$false] %s3034_s15 }
 0x4e0   : > { %s3036_s13 = scalar_lea.vmem %s3035_s15, 1024  ;;  %p3037_p12 = scmp.lt.s32.totalorder %s3754_s22, %s3035_s15 }
 0x4e1   : > { %p3959_p9 = scmp.ne.s32.totalorder %s3957_s25, 0  ;;  %p3038_p13 = scmp.lt.s32.totalorder %s3036_s13, %s3030_s17 }
 0x4e2   : > { %s3751_s9 = scalar_lea.hbm %s3958_s30, %s2354_s2 }
 0x4e3   : > { %p3032_p10 = pnand %p3031_p1, %p3959_p9  ;;  %p3039_p2 = por %p3038_p13, %p3037_p12 }
 0x4e5   : > { %p3033_p8 = pneg %p3032_p10 }
 0x4e7   : > { %p3040_p6 = pnand %p3039_p2, %p3033_p8 }
 0x4e9   : > { %3043 = shalt.err (!%p3040_p6)
}
 0x4ea   : > { %s3044_s6 = scalar_lea.hbm %s3751_s9, 512  ;;  %s3048_s1 = scalar_lea.hbm %s3958_s30, 1024 }
 0x4eb   : > { %p3045_p11 = scmp.ne.s32.totalorder %s3751_s9, %s3044_s6  ;;  %p3049_p5 = scmp.lt.u32.totalorder %s3751_s9, %s3958_s30 }
 0x4ec   : > { %p3050_p7 = scmp.lt.u32.totalorder %s3048_s1, %s3044_s6  ;;  %p3052_p1 = scmp.lt.u32.totalorder %s3044_s6, %s3751_s9 }
 0x4ed   : > { %p3046_p3 = pnand %p3045_p11, %p3959_p9 }
 0x4ee   : > { %p3051_p0 = por %p3050_p7, %p3049_p5 }
 0x4ef   : > { %p3047_p4 = pneg %p3046_p3 }
 0x4f0   : > { %p3053_p10 = por %p3052_p1, %p3051_p0 }
 0x4f2   : > { %p3054_p8 = pnand %p3053_p10, %p3047_p4 }
 0x4f4   : > { %3057 = shalt.err (!%p3054_p8)
}
 0x4f5   : > { %s3195_s12 = smov 128   ;;  %s3196_s16 = smov 8  }
 0x4f6   : > { %2546 = dma.vmem_to_hbm [thread:$0]  (%p3959_p9), %s3754_s22, 512, %s3751_s9, %s3758_s29, %s3195_s12, %s3195_s12, %s3196_s16  }
 0x4f7   : > { %s3960_s20 = sld [smem:[#allocation41_spill]]  ;;  %s1967_s28 = sshll.u32 %s3588_s19, 4  ;;  %s3793_s28 = int_to_ptr.vmem [resolvable:$true] %s1967_s28 }
 0x4f8   : > { %s1948_s15 = scalar_lea.sflag [#allocation6], %s3569_s24  ;;  %s3058_s13 = scalar_lea.vmem %s3793_s28, 512 }
 0x4f9   : > { %p3059_p12 = scmp.ne.s32.totalorder %s3793_s28, %s3058_s13  ;;  %s3197_s6 = smov [#allocation16]  }
 0x4fa   : > { %s3062_s9 = sshll.u32 %s3197_s6, 4  ;;  %s3063_s9 = int_to_ptr.vmem [resolvable:$false] %s3062_s9 }
 0x4fb   : > { %p3060_p13 = pnand %p3059_p12, %p3959_p9  ;;  %s3064_s22 = scalar_lea.vmem %s3063_s9, 1024 }
 0x4fc   : > { %p3065_p6 = scmp.lt.s32.totalorder %s3793_s28, %s3063_s9  ;;  %p3066_p11 = scmp.lt.s32.totalorder %s3064_s22, %s3058_s13 }
 0x4fd   : > { %s3961_s10 = smov %s3960_s20  ;;  %s3790_s17 = scalar_lea.hbm %s3960_s20, %s2354_s2 }
 0x4fe   : > { %p3061_p2 = pneg %p3060_p13  ;;  %p3067_p3 = por %p3066_p11, %p3065_p6 }
 0x500   : > { %p3068_p4 = pnand %p3067_p3, %p3061_p2 }
 0x502   : > { %3071 = shalt.err (!%p3068_p4)
}
 0x503   : > { %s3072_s19 = scalar_lea.hbm %s3790_s17, 512  ;;  %s3076_s0 = scalar_lea.hbm %s3961_s10, 1024 }
 0x504   : > { %p3073_p5 = scmp.ne.s32.totalorder %s3790_s17, %s3072_s19  ;;  %p3077_p1 = scmp.lt.u32.totalorder %s3790_s17, %s3961_s10 }
 0x505   : > { %p3078_p10 = scmp.lt.u32.totalorder %s3076_s0, %s3072_s19  ;;  %p3080_p12 = scmp.lt.u32.totalorder %s3072_s19, %s3790_s17 }
 0x506   : > { %p3074_p7 = pnand %p3073_p5, %p3959_p9 }
 0x507   : > { %p3079_p8 = por %p3078_p10, %p3077_p1 }
 0x508   : > { %p3075_p0 = pneg %p3074_p7 }
 0x509   : > { %p3081_p13 = por %p3080_p12, %p3079_p8 }
 0x50b   : > { %p3082_p2 = pnand %p3081_p13, %p3075_p0 }
 0x50d   : > { %3085 = shalt.err (!%p3082_p2)
}
 0x50e   : > { %2545 = dma.vmem_to_hbm [thread:$0]  (%p3959_p9), %s3793_s28, 512, %s3790_s17, %s1948_s15, %s3195_s12, %s3195_s12, %s3196_s16  }
 0x50f   : > { %s3198_s27 = smov [#allocation19]   ;;  %p3962_p11 = scmp.eq.s32.totalorder %s3303_s11, 1 }
 0x510   : > { %s2001_s26 = sshll.u32 %s3198_s27, 4  ;;  %s2002_s26 = int_to_ptr.vmem [resolvable:$true] %s2001_s26 }
 0x511   : > { %s3086_s18 = scalar_lea.vmem %s2002_s26, 32  ;;  %p3093_p5 = scmp.lt.s32.totalorder %s2002_s26, %s2002_s26 }
 0x512   : > { %p3087_p6 = scmp.ne.s32.totalorder %s2002_s26, %s3086_s18  ;;  %p3094_p7 = scmp.lt.s32.totalorder %s3086_s18, %s3086_s18 }
 0x514   : > { %p3088_p3 = pnand %p3087_p6, %p3962_p11  ;;  %p3095_p0 = por %p3094_p7, %p3093_p5 }
 0x516   : > { %p3089_p4 = pneg %p3088_p3 }
 0x518   : > { %p3096_p1 = pnand %p3095_p0, %p3089_p4 }
 0x51a   : > { %3099 = shalt.err (!%p3096_p1)
}
 0x51b   : > { %s3963_s24 = sld [smem:[#allocation44_spill]]  ;;  %p3964_p10 = pmov %p3962_p11 }
 0x521   : > { %s3100_s20 = scalar_lea.hbm %s3963_s24, 32 }
 0x522   : > { %p3101_p9 = scmp.ne.s32.totalorder %s3963_s24, %s3100_s20  ;;  %p3106_p13 = scmp.lt.u32.totalorder %s3100_s20, %s3963_s24 }
 0x524   : > { %p3102_p8 = pnand %p3101_p9, %p3964_p10 }
 0x526   : > { %p3103_p12 = pneg %p3102_p8 }
 0x528   : > { %p3108_p2 = pnand %p3106_p13, %p3103_p12 }
 0x52a   : > { %3111 = shalt.err (!%p3108_p2)
}
 0x52b   : > { %p3965_p6 = pmov %p3964_p10 }
 0x52d   : > { %2548 = dma.vmem_to_hbm [thread:$0]  (%p3965_p6), %s2002_s26, 32, %s3963_s24, [#allocation18]  }
 0x52e   : > { %p3966_p11 = pmov %p3965_p6 }
 0x52f   : > { %p3967_p3 = pmov %p3965_p6 }
 0x530   : > { %3145 = dma.done.wait (%p3966_p11), [#allocation18], 32  }
 0x531   : > { %3147 = vsyncadd (%p3967_p3), [#allocation18], 4294967264 }
 0x532 PF: > { %s3968_s6 = sld [smem:[#allocation27_spill]]  ;;  %s3969_s9 = sld [smem:[#allocation29_spill]] }
 0x533   : > { %p3971_p5 = scmp.ge.s32.totalorder %s3170_s23, 2 }
 0x538   : > { %s2020_s22 = sand.u32 1, %s3968_s6   ;;  %p3970_p4 = scmp.ne.s32.totalorder %s3969_s9, 0 }
 0x539   : > { %s2021_s19 = scalar_lea.sflag [#allocation6], %s2020_s22 }
 0x53a   : > { %p2577_p7 = pnand %p3971_p5, %p3970_p4 }
 0x53c   : > { %3149 = dma.done.wait (!%p2577_p7), %s2021_s19, 512  }
 0x53d   : > { %3151 = vsyncadd (!%p2577_p7), %s2021_s19, 4294966784  ;;  %s3972_s2 = sadd.s32 4294967294, %s3170_s23  }
 0x53e   : > { %s2029_s29 = sand.u32 1, %s3972_s2  }
 0x53f   : > { %s2030_s0 = scalar_lea.sflag [#allocation18], %s2029_s29 }
 0x540   : > { %3153 = dma.done.wait (!%p2577_p7), %s2030_s0, 512  }
 0x541   : > { %3155 = vsyncadd (!%p2577_p7), %s2030_s0, 4294966784  ;;  %s3973_s23 = sld [smem:[#allocation30_spill]]  ;;  %s3974_s11 = sld [smem:[#allocation28_spill]] }
 0x542   : > { %s3975_s22 = sld [smem:[#allocation31_spill]]  ;;  %s3976_s20 = smov %s3162_s21 }
 0x547   : > { %p37_p0 = scmp.ge.s32.totalorder %s3973_s23, 4   ;;  %s3977_s21 = smov %s3974_s11 }
 0x549   :  { %39 = sbr.rel (!%p37_p0) target bundleno = 23 (0x17), region = 188 }
 0x550   :  { %2035 = vsyncpa [#allocation5], 1 }
 0x551   :  { %2037 = vsyncpa [#allocation5 + $0x1], 1 }
 0x552   :  { %2038 = vsyncpa [#allocation8], 1 }
 0x553   :  { %2039 = vsyncpa [#allocation11], 1 }
 0x554   :  { %2041 = vsyncpa [#allocation11 + $0x1], 1 }
 0x555   :  { %2042 = vsyncpa [#allocation14], 1 }
 0x556   :  { %2043 = vsyncpa [#allocation6], 1 }
 0x557   :  { %2045 = vsyncpa [#allocation6 + $0x1], 1 }
 0x558   :  { %2046 = vsyncpa [#allocation18], 1 }
 0x559   :  { %2048 = vsyncpa [#allocation18 + $0x1], 1 }

</bundles_post_ra>
